<compile_context>
chip_gen: v6e
topology: v6e:2x2x1
jax: 0.10.0
libtpu: 0.0.40
codegen_flags: <defaults>
</compile_context>

<pallas_src>
import functools

import jax
import jax.numpy as jnp
from jax.experimental import pallas as pl
from jax.experimental.pallas import tpu as pltpu


def _round_up(x, m):
    return ((x + m - 1) // m) * m


def mlp_kernel(x_ref, w0_ref, wh_ref, b_ref, out_ref):
    """Fused Linear -> ReLU (-> Dropout=identity) stack on one batch tile.

    x_ref : (tile, K0)            bf16  (K0 = D_in zero-padded to mult. of 128)
    w0_ref: (K0, D_h)             bf16
    wh_ref: (n_hidden, D_h, D_h)  bf16  (identical-shape hidden weights, stacked)
    b_ref : (n_hidden + 1, D_h)   f32   (all biases, stacked)
    out   : (tile, D_h)           f32
    """
    n_hidden = wh_ref.shape[0]
    biases = b_ref[...]                                   # tiny (L, D_h) f32 load

    # Layer 0: bf16 x bf16 -> f32 accumulate on the MXU; bias + ReLU in f32.
    acc = jnp.dot(x_ref[...], w0_ref[...], preferred_element_type=jnp.float32)
    act = jnp.maximum(acc + biases[0:1, :], 0.0)

    for i in range(n_hidden):
        h = act.astype(jnp.bfloat16)                      # bf16 carry (fused into ReLU epilogue)
        acc = jnp.dot(h, wh_ref[i], preferred_element_type=jnp.float32)
        act = jnp.maximum(acc + biases[i + 1:i + 2, :], 0.0)
        # Dropout: identity at inference.

    out_ref[...] = act.astype(out_ref.dtype)              # lane-dense (tile, D_h) store


def prepare_params(weights, biases, operand_dtype=jnp.bfloat16):
    """One-time parameter prep, hoisted out of the hot path.

    weights[i] is stored transposed vs. torch, i.e. (fan_in, fan_out), so the
    kernel computes h @ W + b == torch's x @ W.T + b.
    Pads the first-layer fan-in to a lane-dense multiple of 128 (zeros do not
    change results), casts weights to the MXU operand dtype, and stacks the
    identical hidden-layer weights / all biases so the kernel takes 3
    parameter inputs instead of 2 * n_layers.
    """
    assert len(weights) >= 2, "expected at least one hidden block (n_hidden >= 1)"
    D_in, D_h = weights[0].shape
    K0 = _round_up(D_in, 128)

    w0 = weights[0]
    if K0 != D_in:
        w0 = jnp.pad(w0, ((0, K0 - D_in), (0, 0)))
    w0 = w0.astype(operand_dtype)

    wh = jnp.stack(list(weights[1:])).astype(operand_dtype)        # (n_hidden, D_h, D_h)
    b_all = jnp.stack([b.reshape(-1) for b in biases]).astype(jnp.float32)  # (L, D_h)
    return w0, wh, b_all


def _num_parallel_steps():
    """Grid steps worth exposing as 'parallel' work: 2 on v7x (2 TCs/chip), else 1."""
    try:
        kind = jax.devices()[0].device_kind.lower()
    except Exception:
        return 1
    return 2 if "v7" in kind else 1


def pick_batch_tile(B, max_tile=512):
    """One fat step on single-TC chips (v5e/v6e); >= 2 parallel steps on v7x."""
    n_steps = _num_parallel_steps()
    tile = _round_up(max(pl.cdiv(max(B, 8), n_steps), 8), 8)
    return int(min(tile, max_tile))


@functools.partial(jax.jit, static_argnames=("batch_tile",))
def _rn_mlp_pallas(x, w0, wh, b_all, *, batch_tile):
    B, D_in = x.shape
    K0, D_h = w0.shape

    # Activation-side prep (per call, tiny): cast to bf16 (halves the x DMA and
    # the kernel carry), zero-pad features to K0, pad batch to the tile.
    x = x.astype(w0.dtype)
    if K0 != D_in:
        x = jnp.pad(x, ((0, 0), (0, K0 - D_in)))
    B_pad = _round_up(B, batch_tile)
    if B_pad != B:
        x = jnp.pad(x, ((0, B_pad - B), (0, 0)))

    single = pl.Buffered(1)  # grid-invariant params: no double buffering needed

    out = pl.pallas_call(
        mlp_kernel,
        out_shape=jax.ShapeDtypeStruct((B_pad, D_h), jnp.float32),
        grid=(B_pad // batch_tile,),
        in_specs=[
            pl.BlockSpec((batch_tile, K0), lambda i: (i, 0)),
            pl.BlockSpec(w0.shape, lambda i: (0, 0), pipeline_mode=single),
            pl.BlockSpec(wh.shape, lambda i: (0, 0, 0), pipeline_mode=single),
            pl.BlockSpec(b_all.shape, lambda i: (0, 0), pipeline_mode=single),
        ],
        out_specs=pl.BlockSpec((batch_tile, D_h), lambda i: (i, 0)),
        compiler_params=pltpu.CompilerParams(
            dimension_semantics=("parallel",),
            vmem_limit_bytes=48 * 1024 * 1024,
        ),
    )(x, w0, wh, b_all)
    return out[:B]


def rn_mlp_forward(x, prepared_params, batch_tile=None):
    """Run the fused RN_MLP forward with device-adaptive batch tiling."""
    if batch_tile is None:
        batch_tile = pick_batch_tile(x.shape[0])
    w0, wh, b_all = prepared_params
    return _rn_mlp_pallas(x, w0, wh, b_all, batch_tile=batch_tile)


def init_rn_mlp_params(key, D_in, D_h, n_hidden):
    """Deterministic params matching RN_MLP.__init__ shapes.

    Weights: xavier-uniform (as in _make_block); biases: PyTorch Linear default
    uniform(-1/sqrt(fan_in), 1/sqrt(fan_in)). Stored transposed as (fan_in, fan_out).
    """
    dims = [(D_in, D_h)] + [(D_h, D_h)] * n_hidden
    weights, biases = [], []
    for (fan_in, fan_out) in dims:
        key, kw, kb = jax.random.split(key, 3)
        limit = (6.0 / (fan_in + fan_out)) ** 0.5
        w = jax.random.uniform(kw, (fan_in, fan_out), jnp.float32,
                               minval=-limit, maxval=limit)
        b_bound = 1.0 / (fan_in ** 0.5)
        b = jax.random.uniform(kb, (1, fan_out), jnp.float32,
                               minval=-b_bound, maxval=b_bound)
        weights.append(w)
        biases.append(b)
    return weights, biases


def reference_forward(x, weights, biases):
    """Pure-JAX f32 reference of RN_MLP.forward (eval mode: dropout = identity)."""
    h = x
    for w, b in zip(weights, biases):
        h = jnp.maximum(h @ w + b, 0.0)
    return h


if __name__ == "__main__":
    # Module defaults: D_h=256, n_hidden=4; D_in=32.  B=256 -> one fat grid
    # step on single-TC v5e/v6e, or two 128-row parallel steps on v7x.
    B, D_in, D_h, n_hidden = 256, 32, 256, 4

    key = jax.random.PRNGKey(0)
    key, kx = jax.random.split(key)
    x = jax.random.normal(kx, (B, D_in), jnp.float32)

    weights, biases = init_rn_mlp_params(key, D_in, D_h, n_hidden)
    params = prepare_params(weights, biases)        # one-time: pad / cast / stack

    out = rn_mlp_forward(x, params)
    out = jax.block_until_ready(out)

    ref = reference_forward(x, weights, biases)
    assert out.shape == (B, D_h)
    # bf16 MXU operands + bf16 inter-layer carry vs f32 reference -> relaxed tolerance.
    max_err = float(jnp.max(jnp.abs(out - ref)))
    assert jnp.allclose(out, ref, atol=7.5e-2, rtol=7.5e-2), max_err

    print("KERNEL_OK")
</pallas_src>

<mosaic_0001>
module attributes {stable_mosaic.version = 11 : i64} {
  func.func @mlp_kernel(%arg0: i32, %arg1: memref<256x128xbf16, #tpu.memory_space<vmem>>, %arg2: memref<128x256xbf16, #tpu.memory_space<vmem>>, %arg3: memref<4x256x256xbf16, #tpu.memory_space<vmem>>, %arg4: memref<5x256xf32, #tpu.memory_space<vmem>>, %arg5: memref<256x256xf32, #tpu.memory_space<vmem>>) attributes {dimension_semantics = [#tpu.dimension_semantics<parallel>], iteration_bounds = array<i64: 1>, scalar_prefetch = 0 : i64, scratch_operands = 0 : i64, tpu.core_type = #tpu.core_type<tc>, window_params = [{transform_indices = @transform_0, window_bounds = array<i64: 256, 128>}, {pipeline_mode = #tpu.pipeline_mode<synchronous>, transform_indices = @transform_1, window_bounds = array<i64: 128, 256>}, {pipeline_mode = #tpu.pipeline_mode<synchronous>, transform_indices = @transform_2, window_bounds = array<i64: 4, 256, 256>}, {pipeline_mode = #tpu.pipeline_mode<synchronous>, transform_indices = @transform_3, window_bounds = array<i64: 5, 256>}, {transform_indices = @transform_4, window_bounds = array<i64: 256, 256>}]} {
    %c0 = arith.constant 0 : index
    %c0_0 = arith.constant 0 : index
    %0 = vector.load %arg4[%c0, %c0_0] : memref<5x256xf32, #tpu.memory_space<vmem>>, vector<5x256xf32>
    %c0_1 = arith.constant 0 : index
    %c0_2 = arith.constant 0 : index
    %1 = vector.load %arg1[%c0_1, %c0_2] : memref<256x128xbf16, #tpu.memory_space<vmem>>, vector<256x128xbf16>
    %c0_3 = arith.constant 0 : index
    %c0_4 = arith.constant 0 : index
    %2 = vector.load %arg2[%c0_3, %c0_4] : memref<128x256xbf16, #tpu.memory_space<vmem>>, vector<128x256xbf16>
    %cst = arith.constant dense<0.000000e+00> : vector<256x256xf32>
    %3 = tpu.matmul %1, %2, %cst {dimension_numbers = #tpu.dot_dimension_numbers<[1], [0], [0], [1], [0, 0, 1, 1], [], []>} : vector<256x128xbf16>, vector<128x256xbf16>, vector<256x256xf32> -> vector<256x256xf32>
    %4 = vector.extract_strided_slice %0 {offsets = [0, 0], sizes = [1, 256], strides = [1, 1]} : vector<5x256xf32> to vector<1x256xf32>
    %5 = vector.broadcast %4 : vector<1x256xf32> to vector<256x256xf32>
    %6 = arith.addf %3, %5 : vector<256x256xf32>
    %cst_5 = arith.constant 0.000000e+00 : f32
    %7 = vector.broadcast %cst_5 : f32 to vector<256x256xf32>
    %8 = arith.maximumf %6, %7 : vector<256x256xf32>
    %9 = arith.truncf %8 : vector<256x256xf32> to vector<256x256xbf16>
    %c0_6 = arith.constant 0 : index
    %c0_7 = arith.constant 0 : index
    %c0_8 = arith.constant 0 : index
    %10 = vector.load %arg3[%c0_6, %c0_7, %c0_8] : memref<4x256x256xbf16, #tpu.memory_space<vmem>>, vector<1x256x256xbf16>
    %11 = vector.shape_cast %10 : vector<1x256x256xbf16> to vector<256x256xbf16>
    %cst_9 = arith.constant dense<0.000000e+00> : vector<256x256xf32>
    %12 = tpu.matmul %9, %11, %cst_9 {dimension_numbers = #tpu.dot_dimension_numbers<[1], [0], [0], [1], [0, 0, 1, 1], [], []>} : vector<256x256xbf16>, vector<256x256xbf16>, vector<256x256xf32> -> vector<256x256xf32>
    %13 = vector.extract_strided_slice %0 {offsets = [1, 0], sizes = [1, 256], strides = [1, 1]} : vector<5x256xf32> to vector<1x256xf32>
    %14 = vector.broadcast %13 : vector<1x256xf32> to vector<256x256xf32>
    %15 = arith.addf %12, %14 : vector<256x256xf32>
    %cst_10 = arith.constant 0.000000e+00 : f32
    %16 = vector.broadcast %cst_10 : f32 to vector<256x256xf32>
    %17 = arith.maximumf %15, %16 : vector<256x256xf32>
    %18 = arith.truncf %17 : vector<256x256xf32> to vector<256x256xbf16>
    %c1 = arith.constant 1 : index
    %c0_11 = arith.constant 0 : index
    %c0_12 = arith.constant 0 : index
    %19 = vector.load %arg3[%c1, %c0_11, %c0_12] : memref<4x256x256xbf16, #tpu.memory_space<vmem>>, vector<1x256x256xbf16>
    %20 = vector.shape_cast %19 : vector<1x256x256xbf16> to vector<256x256xbf16>
    %cst_13 = arith.constant dense<0.000000e+00> : vector<256x256xf32>
    %21 = tpu.matmul %18, %20, %cst_13 {dimension_numbers = #tpu.dot_dimension_numbers<[1], [0], [0], [1], [0, 0, 1, 1], [], []>} : vector<256x256xbf16>, vector<256x256xbf16>, vector<256x256xf32> -> vector<256x256xf32>
    %22 = vector.extract_strided_slice %0 {offsets = [2, 0], sizes = [1, 256], strides = [1, 1]} : vector<5x256xf32> to vector<1x256xf32>
    %23 = vector.broadcast %22 : vector<1x256xf32> to vector<256x256xf32>
    %24 = arith.addf %21, %23 : vector<256x256xf32>
    %cst_14 = arith.constant 0.000000e+00 : f32
    %25 = vector.broadcast %cst_14 : f32 to vector<256x256xf32>
    %26 = arith.maximumf %24, %25 : vector<256x256xf32>
    %27 = arith.truncf %26 : vector<256x256xf32> to vector<256x256xbf16>
    %c2 = arith.constant 2 : index
    %c0_15 = arith.constant 0 : index
    %c0_16 = arith.constant 0 : index
    %28 = vector.load %arg3[%c2, %c0_15, %c0_16] : memref<4x256x256xbf16, #tpu.memory_space<vmem>>, vector<1x256x256xbf16>
    %29 = vector.shape_cast %28 : vector<1x256x256xbf16> to vector<256x256xbf16>
    %cst_17 = arith.constant dense<0.000000e+00> : vector<256x256xf32>
    %30 = tpu.matmul %27, %29, %cst_17 {dimension_numbers = #tpu.dot_dimension_numbers<[1], [0], [0], [1], [0, 0, 1, 1], [], []>} : vector<256x256xbf16>, vector<256x256xbf16>, vector<256x256xf32> -> vector<256x256xf32>
    %31 = vector.extract_strided_slice %0 {offsets = [3, 0], sizes = [1, 256], strides = [1, 1]} : vector<5x256xf32> to vector<1x256xf32>
    %32 = vector.broadcast %31 : vector<1x256xf32> to vector<256x256xf32>
    %33 = arith.addf %30, %32 : vector<256x256xf32>
    %cst_18 = arith.constant 0.000000e+00 : f32
    %34 = vector.broadcast %cst_18 : f32 to vector<256x256xf32>
    %35 = arith.maximumf %33, %34 : vector<256x256xf32>
    %36 = arith.truncf %35 : vector<256x256xf32> to vector<256x256xbf16>
    %c3 = arith.constant 3 : index
    %c0_19 = arith.constant 0 : index
    %c0_20 = arith.constant 0 : index
    %37 = vector.load %arg3[%c3, %c0_19, %c0_20] : memref<4x256x256xbf16, #tpu.memory_space<vmem>>, vector<1x256x256xbf16>
    %38 = vector.shape_cast %37 : vector<1x256x256xbf16> to vector<256x256xbf16>
    %cst_21 = arith.constant dense<0.000000e+00> : vector<256x256xf32>
    %39 = tpu.matmul %36, %38, %cst_21 {dimension_numbers = #tpu.dot_dimension_numbers<[1], [0], [0], [1], [0, 0, 1, 1], [], []>} : vector<256x256xbf16>, vector<256x256xbf16>, vector<256x256xf32> -> vector<256x256xf32>
    %40 = vector.extract_strided_slice %0 {offsets = [4, 0], sizes = [1, 256], strides = [1, 1]} : vector<5x256xf32> to vector<1x256xf32>
    %41 = vector.broadcast %40 : vector<1x256xf32> to vector<256x256xf32>
    %42 = arith.addf %39, %41 : vector<256x256xf32>
    %cst_22 = arith.constant 0.000000e+00 : f32
    %43 = vector.broadcast %cst_22 : f32 to vector<256x256xf32>
    %44 = arith.maximumf %42, %43 : vector<256x256xf32>
    %c0_23 = arith.constant 0 : index
    %c0_24 = arith.constant 0 : index
    %45 = vector.load %arg5[%c0_23, %c0_24] : memref<256x256xf32, #tpu.memory_space<vmem>>, vector<256x256xf32>
    tpu.vector_store %arg5[%c0_23, %c0_24], %44 {strides = array<i32>} : memref<256x256xf32, #tpu.memory_space<vmem>>, vector<256x256xf32>,
    return
  }
  func.func @transform_0(%arg0: i32) -> (i32, i32) {
    %c0_i32 = arith.constant 0 : i32
    %c0_i32_0 = arith.constant 0 : i32
    return %arg0, %c0_i32 : i32, i32
  }
  func.func @transform_1(%arg0: i32) -> (i32, i32) {
    %c0_i32 = arith.constant 0 : i32
    %c0_i32_0 = arith.constant 0 : i32
    %c0_i32_1 = arith.constant 0 : i32
    return %c0_i32, %c0_i32_0 : i32, i32
  }
  func.func @transform_2(%arg0: i32) -> (i32, i32, i32) {
    %c0_i32 = arith.constant 0 : i32
    %c0_i32_0 = arith.constant 0 : i32
    %c0_i32_1 = arith.constant 0 : i32
    %c0_i32_2 = arith.constant 0 : i32
    return %c0_i32, %c0_i32_0, %c0_i32_1 : i32, i32, i32
  }
  func.func @transform_3(%arg0: i32) -> (i32, i32) {
    %c0_i32 = arith.constant 0 : i32
    %c0_i32_0 = arith.constant 0 : i32
    %c0_i32_1 = arith.constant 0 : i32
    return %c0_i32, %c0_i32_0 : i32, i32
  }
  func.func @transform_4(%arg0: i32) -> (i32, i32) {
    %c0_i32 = arith.constant 0 : i32
    %c0_i32_0 = arith.constant 0 : i32
    return %arg0, %c0_i32 : i32, i32
  }
}

</mosaic_0001>

<bundles_post_ra>
// kernel: _rn_mlp_pallas.1
= control target key start
LH: loop header
LB: loop body
LE: loop exit
PB: predicated region body
PF: predicated region fallthrough
CT: control target
= control target key end

     0   :  { %9 = vsyncpa [#allocation3], 0  ;;  %s3621_s0 = inlined_call_operand.vmem [shape: bf16[256,128], index: 0, kind: input, shape index: {}]   ;;  %s3622_s1 = inlined_call_operand.vmem [shape: bf16[128,256], index: 1, kind: input, shape index: {}]   ;;  %s3623_s2 = inlined_call_operand.hbm [shape: bf16[4,256,256], index: 2, kind: input, shape index: {}]   ;;  %s3624_s3 = inlined_call_operand.vmem [shape: f32[5,256], index: 3, kind: input, shape index: {}]   ;;  %s3625_s4 = inlined_call_operand.hbm [shape: f32[256,256], index: 4, kind: output, shape index: {}]  }
   0x1   :  { %10 = vsyncpa [#allocation4], 0  ;;  %s3027_s15 = smov [#allocation2]  }
   0x2   :  { %s20_s16 = sshll.u32 %s3027_s15, 4  ;;  %s21_s16 = int_to_ptr.vmem [resolvable:$true] %s20_s16 }
   0x3   :  { %s2991_s17 = scalar_lea.vmem %s21_s16, 16384  ;;  %p2996_p1 = scmp.lt.s32.totalorder %s21_s16, %s21_s16 }
   0x4   :  { %p2992_p0 = scmp.ne.s32.totalorder %s21_s16, %s2991_s17  ;;  %p2997_p2 = scmp.lt.s32.totalorder %s2991_s17, %s2991_s17 }
   0x6   :  { %p2998_p3 = por %p2997_p2, %p2996_p1 }
   0x8   :  { %p2999_p4 = pnand %p2998_p3, %p2992_p0 }
   0xa   :  { %3002 = shalt.err (!%p2999_p4)
}
   0xb   :  { %s3028_s18 = smov 128   ;;  %s3029_s19 = smov 8  }
   0xc   :  { %26 = dma.hbm_to_vmem [thread:$0]  %s3623_s2, 16384, %s21_s16, [#allocation3], %s3028_s18, %s3028_s18, %s3029_s19  }
   0xd   :  { %3023 = dma.done.wait [#allocation3], 16384  }
   0xe   :  { %3024 = vsyncadd [#allocation3], 4294950912  ;;  %v3030_v0 = vmov 0   ;;  %v2747_v1 = vld [vmem:[%s3622_s1 + $0x74] ss:$8 sps:$4 sm:$0xff]   ;;  %v2771_v18 = vld [vmem:[%s3621_s0] sm:$0xff]  }
   0xf   :  { %299 = vmatprep.mubr.bf16.mxu0 %v3030_v0  ;;  %379 = vmatprep.mubr.bf16.mxu1 %v3030_v0  ;;  %v2749_v2 = vld [vmem:[%s3622_s1 + $0x70] ss:$8 sps:$4 sm:$0xff]   ;;  %v2750_v3 = vld [vmem:[%s3622_s1 + $0x64] ss:$8 sps:$4 sm:$0xff]   ;;  %v2752_v4 = vld [vmem:[%s3622_s1 + $0x60] ss:$8 sps:$4 sm:$0xff]  }
  0x10   :  { %267 = vmatprep.subr.bf16.mxu0 %v2747_v1  ;;  %2724 = vmatprep.subr.bf16.mxu1 %v2747_v1  ;;  %v2753_v5 = vld [vmem:[%s3622_s1 + $0x54] ss:$8 sps:$4 sm:$0xff]   ;;  %v2755_v6 = vld [vmem:[%s3622_s1 + $0x50] ss:$8 sps:$4 sm:$0xff]   ;;  %v2756_v7 = vld [vmem:[%s3622_s1 + $0x44] ss:$8 sps:$4 sm:$0xff]   ;;  %v83_v1 = vlaneseq }
  0x11   :  { %268 = vmatpush1.bf16.msra.mxu0 %v2749_v2  ;;  %2732 = vmatpush1.bf16.msra.mxu1 %v2749_v2  ;;  %v2758_v8 = vld [vmem:[%s3622_s1 + $0x40] ss:$8 sps:$4 sm:$0xff]   ;;  %v2759_v9 = vld [vmem:[%s3622_s1 + $0x34] ss:$8 sps:$4 sm:$0xff]   ;;  %v2761_v10 = vld [vmem:[%s3622_s1 + $0x30] ss:$8 sps:$4 sm:$0xff]  }
  0x12   :  { %269 = vmatprep.subr.bf16.mxu0 %v2750_v3  ;;  %2725 = vmatprep.subr.bf16.mxu1 %v2750_v3  ;;  %v2762_v11 = vld [vmem:[%s3622_s1 + $0x24] ss:$8 sps:$4 sm:$0xff]   ;;  %v2764_v12 = vld [vmem:[%s3622_s1 + $0x20] ss:$8 sps:$4 sm:$0xff]   ;;  %v2765_v13 = vld [vmem:[%s3622_s1 + $0x14] ss:$8 sps:$4 sm:$0xff]  }
  0x13   :  { %v2767_v14 = vld [vmem:[%s3622_s1 + $0x10] ss:$8 sps:$4 sm:$0xff]   ;;  %v2768_v15 = vld [vmem:[%s3622_s1 + $0x4] ss:$8 sps:$4 sm:$0xff]   ;;  %v2770_v16 = vld [vmem:[%s3622_s1] ss:$8 sps:$4 sm:$0xff]  }
  0x14   :  { %v2789_v17 = vld [vmem:[#allocation2 + $0x74] ss:$8 sps:$4 sm:$0xff]   ;;  %v2779_v19 = vld [vmem:[%s3621_s0 + $0x40] sm:$0xff]   ;;  %v2787_v20 = vld [vmem:[#allocation2 + $0x70] ss:$8 sps:$4 sm:$0xff]   ;;  %v3174_v2 = vshrl.u32 %v83_v1, 7 }
  0x15   :  { %270 = vmatpush1.bf16.msra.mxu0 %v2752_v4  ;;  %2733 = vmatpush1.bf16.msra.mxu1 %v2752_v4  ;;  %v2792_v21 = vld [vmem:[#allocation2 + $0x64] ss:$8 sps:$4 sm:$0xff]   ;;  %v2790_v22 = vld [vmem:[#allocation2 + $0x60] ss:$8 sps:$4 sm:$0xff]   ;;  %v2795_v23 = vld [vmem:[#allocation2 + $0x54] ss:$8 sps:$4 sm:$0xff]  }
  0x16   :  { %271 = vmatprep.subr.bf16.mxu0 %v2753_v5  ;;  %2726 = vmatprep.subr.bf16.mxu1 %v2753_v5  ;;  %v2772_v24 = vld [vmem:[%s3621_s0 + $0x8] sm:$0xff]   ;;  %v2793_v26 = vld [vmem:[#allocation2 + $0x50] ss:$8 sps:$4 sm:$0xff]   ;;  %v2801_v31 = vld [vmem:[#allocation2 + $0x34] ss:$8 sps:$4 sm:$0xff]   ;;  %v85_v3 = vsub.s32 0, %v3174_v2 }
  0x17   :  { %v2780_v25 = vld [vmem:[%s3621_s0 + $0x48] sm:$0xff]   ;;  %v2773_v29 = vld [vmem:[%s3621_s0 + $0x10] sm:$0xff]   ;;  %v2774_v36 = vld [vmem:[%s3621_s0 + $0x18] sm:$0xff]  }
  0x18   :  { %v2798_v27 = vld [vmem:[#allocation2 + $0x44] ss:$8 sps:$4 sm:$0xff]   ;;  %v2796_v28 = vld [vmem:[#allocation2 + $0x40] ss:$8 sps:$4 sm:$0xff]   ;;  %v2781_v30 = vld [vmem:[%s3621_s0 + $0x50] sm:$0xff]  }
  0x19   :  { %272 = vmatpush1.bf16.msra.mxu0 %v2755_v6  ;;  %2734 = vmatpush1.bf16.msra.mxu1 %v2755_v6  ;;  %v2799_v32 = vld [vmem:[#allocation2 + $0x30] ss:$8 sps:$4 sm:$0xff]   ;;  %v2804_v33 = vld [vmem:[#allocation2 + $0x24] ss:$8 sps:$4 sm:$0xff]   ;;  %v2802_v34 = vld [vmem:[#allocation2 + $0x20] ss:$8 sps:$4 sm:$0xff]  }
  0x1a   :  { %273 = vmatprep.subr.bf16.mxu0 %v2756_v7  ;;  %2727 = vmatprep.subr.bf16.mxu1 %v2756_v7  ;;  %v2807_v35 = vld [vmem:[#allocation2 + $0x14] ss:$8 sps:$4 sm:$0xff]   ;;  %v2805_v38 = vld [vmem:[#allocation2 + $0x10] ss:$8 sps:$4 sm:$0xff]   ;;  %v2810_v39 = vld [vmem:[#allocation2 + $0x4] ss:$8 sps:$4 sm:$0xff]  }
  0x1b   :  { %v2782_v37 = vld [vmem:[%s3621_s0 + $0x58] sm:$0xff]   ;;  %v2808_v40 = vld [vmem:[#allocation2] ss:$8 sps:$4 sm:$0xff]   ;;  %v2816_v45 = vld [vmem:[#allocation2 + $0xe4] ss:$8 sps:$4 sm:$0xff]  }
  0x1c   :  { %v2813_v41 = vld [vmem:[#allocation2 + $0xf4] ss:$8 sps:$4 sm:$0xff]   ;;  %v2775_v42 = vld [vmem:[%s3621_s0 + $0x20] sm:$0xff]   ;;  %v2811_v44 = vld [vmem:[#allocation2 + $0xf0] ss:$8 sps:$4 sm:$0xff]  }
  0x1d   :  { %274 = vmatpush1.bf16.msra.mxu0 %v2758_v8  ;;  %2735 = vmatpush1.bf16.msra.mxu1 %v2758_v8  ;;  %v2783_v43 = vld [vmem:[%s3621_s0 + $0x60] sm:$0xff]   ;;  %v2819_v47 = vld [vmem:[#allocation2 + $0xd4] ss:$8 sps:$4 sm:$0xff]   ;;  %v2776_v48 = vld [vmem:[%s3621_s0 + $0x28] sm:$0xff]  }
  0x1e   :  { %275 = vmatprep.subr.bf16.mxu0 %v2759_v9  ;;  %2728 = vmatprep.subr.bf16.mxu1 %v2759_v9  ;;  %v2814_v46 = vld [vmem:[#allocation2 + $0xe0] ss:$8 sps:$4 sm:$0xff]   ;;  %v2817_v50 = vld [vmem:[#allocation2 + $0xd0] ss:$8 sps:$4 sm:$0xff]   ;;  %v2822_v51 = vld [vmem:[#allocation2 + $0xc4] ss:$8 sps:$4 sm:$0xff]  }
  0x1f   :  { %v2784_v49 = vld [vmem:[%s3621_s0 + $0x68] sm:$0xff]   ;;  %v2825_v53 = vld [vmem:[#allocation2 + $0xb4] ss:$8 sps:$4 sm:$0xff]   ;;  %v2823_v56 = vld [vmem:[#allocation2 + $0xb0] ss:$8 sps:$4 sm:$0xff]  }
  0x20   :  { %v2820_v52 = vld [vmem:[#allocation2 + $0xc0] ss:$8 sps:$4 sm:$0xff]   ;;  %v2777_v54 = vld [vmem:[%s3621_s0 + $0x30] sm:$0xff]   ;;  %v2778_v57 = vld [vmem:[%s3621_s0 + $0x38] sm:$0xff]  }
  0x21   :  { %276 = vmatpush1.bf16.msra.mxu0 %v2761_v10  ;;  %2736 = vmatpush1.bf16.msra.mxu1 %v2761_v10  ;;  %v2785_v55 = vld [vmem:[%s3621_s0 + $0x70] sm:$0xff]   ;;  %v2786_v58 = vld [vmem:[%s3621_s0 + $0x78] sm:$0xff]   ;;  %v2828_v59 = vld [vmem:[#allocation2 + $0xa4] ss:$8 sps:$4 sm:$0xff]  }
  0x22   :  { %277 = vmatprep.subr.bf16.mxu0 %v2762_v11  ;;  %2729 = vmatprep.subr.bf16.mxu1 %v2762_v11  ;;  %v2826_v60 = vld [vmem:[#allocation2 + $0xa0] ss:$8 sps:$4 sm:$0xff]   ;;  %v2831_v61 = vld [vmem:[#allocation2 + $0x94] ss:$8 sps:$4 sm:$0xff]   ;;  %v2829_v62 = vld [vmem:[#allocation2 + $0x90] ss:$8 sps:$4 sm:$0xff]  }
  0x23   :  { %v2834_v63 = vld [vmem:[#allocation2 + $0x84] ss:$8 sps:$4 sm:$0xff]  }
  0x24   :  { %v3180_v4 = vld [vmem:[%s3624_s3 + $0x8] sm:$0x1f]  ;;  %v3185_v5 = vld [vmem:[%s3624_s3] sm:$0x1f] }
  0x25   :  { %278 = vmatpush1.bf16.msra.mxu0 %v2764_v12  ;;  %2737 = vmatpush1.bf16.msra.mxu1 %v2764_v12  ;;  %v3190_v8 = vrot.slane %v3180_v4, %v85_v3  ;;  %v3193_v9 = vrot.slane %v3185_v5, %v85_v3 }
  0x26   :  { %279 = vmatprep.subr.bf16.mxu0 %v2765_v13  ;;  %2730 = vmatprep.subr.bf16.mxu1 %v2765_v13 }
  0x29   :  { %280 = vmatpush1.bf16.msra.mxu0 %v2767_v14  ;;  %2738 = vmatpush1.bf16.msra.mxu1 %v2767_v14 }
  0x2a   :  { %281 = vmatprep.subr.bf16.mxu0 %v2768_v15  ;;  %2731 = vmatprep.subr.bf16.mxu1 %v2768_v15 }
  0x2d   :  { %282 = vmatpush1.bf16.msra.mxu0 %v2770_v16  ;;  %2739 = vmatpush1.bf16.msra.mxu1 %v2770_v16 }
  0x2e   :  { %756 = vmatprep.subr.bf16.mxu1 %v2789_v17 }
  0x30   :  { %300 = vmatmul.mubr.bf16.vlgmr.msra.gmra.mxu0 %v2771_v18  ;;  %380 = vmatmul.mubr.bf16.vlgmr.msra.gmra.mxu1 %v2779_v19  ;;  %v2835_v19 = vld [vmem:[#allocation2 + $0x170] ss:$8 sps:$4 sm:$0xff]  }
  0x31   :  { %309 = vmatprep.mubr.bf16.mxu0 %v3030_v0  ;;  %389 = vmatprep.mubr.bf16.mxu1 %v3030_v0 }
  0x32   :  { %757 = vmatpush1.bf16.msra.mxu1 %v2787_v20  ;;  %v2837_v20 = vld [vmem:[#allocation2 + $0x174] ss:$8 sps:$4 sm:$0xff]  }
  0x33   :  { %758 = vmatprep.subr.bf16.mxu1 %v2792_v21  ;;  %1246 = vmatprep.subr.bf16.mxu0 %v2837_v20 }
  0x34   :  { %1247 = vmatpush1.bf16.msra.mxu0 %v2835_v19 }
  0x36   :  { %759 = vmatpush1.bf16.msra.mxu1 %v2790_v22  ;;  %v2840_v22 = vld [vmem:[#allocation2 + $0x164] ss:$8 sps:$4 sm:$0xff]  }
  0x37   :  { %760 = vmatprep.subr.bf16.mxu1 %v2795_v23  ;;  %1248 = vmatprep.subr.bf16.mxu0 %v2840_v22 }
  0x38   :  { %310 = vmatmul.mubr.bf16.gmra.mxu0 %v2772_v24  ;;  %390 = vmatmul.mubr.bf16.gmra.mxu1 %v2780_v25 }
  0x39   :  { %319 = vmatprep.mubr.bf16.mxu0 %v3030_v0  ;;  %399 = vmatprep.mubr.bf16.mxu1 %v3030_v0 }
  0x3a   :  { %761 = vmatpush1.bf16.msra.mxu1 %v2793_v26 }
  0x3b   :  { %762 = vmatprep.subr.bf16.mxu1 %v2798_v27 }
  0x3e   :  { %763 = vmatpush1.bf16.msra.mxu1 %v2796_v28  ;;  %v2838_v28 = vld [vmem:[#allocation2 + $0x160] ss:$8 sps:$4 sm:$0xff]  }
  0x3f   :  { %764 = vmatprep.subr.bf16.mxu1 %v2801_v31  ;;  %1249 = vmatpush1.bf16.msra.mxu0 %v2838_v28  ;;  %v2858_v28 = vld [vmem:[#allocation2 + $0x104] ss:$8 sps:$4 sm:$0xff]  }
  0x40   :  { %320 = vmatmul.mubr.bf16.gmra.mxu0 %v2773_v29  ;;  %400 = vmatmul.mubr.bf16.gmra.mxu1 %v2781_v30 }
  0x41   :  { %329 = vmatprep.mubr.bf16.mxu0 %v3030_v0  ;;  %409 = vmatprep.mubr.bf16.mxu1 %v3030_v0 }
  0x42   :  { %765 = vmatpush1.bf16.msra.mxu1 %v2799_v32  ;;  %v2843_v32 = vld [vmem:[#allocation2 + $0x154] ss:$8 sps:$4 sm:$0xff]  }
  0x43   :  { %766 = vmatprep.subr.bf16.mxu1 %v2804_v33  ;;  %1250 = vmatprep.subr.bf16.mxu0 %v2843_v32 }
  0x46   :  { %767 = vmatpush1.bf16.msra.mxu1 %v2802_v34 }
  0x47   :  { %768 = vmatprep.subr.bf16.mxu1 %v2807_v35 }
  0x48   :  { %330 = vmatmul.mubr.bf16.gmra.mxu0 %v2774_v36  ;;  %410 = vmatmul.mubr.bf16.gmra.mxu1 %v2782_v37 }
  0x49   :  { %339 = vmatprep.mubr.bf16.mxu0 %v3030_v0  ;;  %419 = vmatprep.mubr.bf16.mxu1 %v3030_v0 }
  0x4a   :  { %769 = vmatpush1.bf16.msra.mxu1 %v2805_v38 }
  0x4b   :  { %770 = vmatprep.subr.bf16.mxu1 %v2810_v39  ;;  %v2841_v39 = vld [vmem:[#allocation2 + $0x150] ss:$8 sps:$4 sm:$0xff]  }
  0x4c   :  { %1251 = vmatpush1.bf16.msra.mxu0 %v2841_v39 }
  0x4e   :  { %771 = vmatpush1.bf16.msra.mxu1 %v2808_v40 }
  0x4f   :  { %772 = vmatprep.subr.bf16.mxu1 %v2813_v41 }
  0x50   :  { %340 = vmatmul.mubr.bf16.gmra.mxu0 %v2775_v42  ;;  %420 = vmatmul.mubr.bf16.gmra.mxu1 %v2783_v43  ;;  %v2846_v42 = vld [vmem:[#allocation2 + $0x144] ss:$8 sps:$4 sm:$0xff]  }
  0x51   :  { %349 = vmatprep.mubr.bf16.mxu0 %v3030_v0  ;;  %429 = vmatprep.mubr.bf16.mxu1 %v3030_v0 }
  0x52   :  { %773 = vmatpush2.bf16.msra.mxu1 %v2811_v44  ;;  %1252 = vmatprep.subr.bf16.mxu0 %v2846_v42 }
  0x53   :  { %774 = vmatprep.subr.bf16.mxu1 %v2816_v45 }
  0x56   :  { %775 = vmatpush2.bf16.msra.mxu1 %v2814_v46 }
  0x57   :  { %776 = vmatprep.subr.bf16.mxu1 %v2819_v47 }
  0x58   :  { %350 = vmatmul.mubr.bf16.gmra.mxu0 %v2776_v48  ;;  %430 = vmatmul.mubr.bf16.gmra.mxu1 %v2784_v49  ;;  %v2844_v49 = vld [vmem:[#allocation2 + $0x140] ss:$8 sps:$4 sm:$0xff]  }
  0x59   :  { %359 = vmatprep.mubr.bf16.mxu0 %v3030_v0  ;;  %439 = vmatprep.mubr.bf16.mxu1 %v3030_v0 }
  0x5a   :  { %777 = vmatpush2.bf16.msra.mxu1 %v2817_v50  ;;  %1253 = vmatpush1.bf16.msra.mxu0 %v2844_v49 }
  0x5b   :  { %778 = vmatprep.subr.bf16.mxu1 %v2822_v51 }
  0x5e   :  { %779 = vmatpush2.bf16.msra.mxu1 %v2820_v52  ;;  %v2849_v52 = vld [vmem:[#allocation2 + $0x134] ss:$8 sps:$4 sm:$0xff]  }
  0x5f   :  { %780 = vmatprep.subr.bf16.mxu1 %v2825_v53  ;;  %1254 = vmatprep.subr.bf16.mxu0 %v2849_v52 }
  0x60   :  { %360 = vmatmul.mubr.bf16.gmra.mxu0 %v2777_v54  ;;  %440 = vmatmul.mubr.bf16.gmra.mxu1 %v2785_v55 }
  0x61   :  { %369 = vmatprep.mubr.bf16.mxu0 %v3030_v0  ;;  %449 = vmatprep.mubr.bf16.mxu1 %v3030_v0  ;;  %v2832_v0 = vld [vmem:[#allocation2 + $0x80] ss:$8 sps:$4 sm:$0xff]  }
  0x62   :  { %781 = vmatpush2.bf16.msra.mxu1 %v2823_v56 }
  0x63   :  { %782 = vmatprep.subr.bf16.mxu1 %v2828_v59  ;;  %v2847_v59 = vld [vmem:[#allocation2 + $0x130] ss:$8 sps:$4 sm:$0xff]  }
  0x64   :  { %1255 = vmatpush1.bf16.msra.mxu0 %v2847_v59  ;;  %v2862_v59 = vld [vmem:[#allocation2 + $0x1e0] ss:$8 sps:$4 sm:$0xff]  }
  0x66   :  { %783 = vmatpush2.bf16.msra.mxu1 %v2826_v60 }
  0x67   :  { %784 = vmatprep.subr.bf16.mxu1 %v2831_v61 }
  0x68   :  { %370 = vmatmul.mubr.bf16.gmra.mxu0 %v2778_v57  ;;  %450 = vmatmul.mubr.bf16.gmra.mxu1 %v2786_v58 }
  0x6a   :  { %785 = vmatpush2.bf16.msra.mxu1 %v2829_v62  ;;  %v2852_v62 = vld [vmem:[#allocation2 + $0x124] ss:$8 sps:$4 sm:$0xff]  }
  0x6b   :  { %786 = vmatprep.subr.bf16.mxu1 %v2834_v63  ;;  %1256 = vmatprep.subr.bf16.mxu0 %v2852_v62  ;;  %v2867_v62 = vld [vmem:[#allocation2 + $0x1d4] ss:$8 sps:$4 sm:$0xff]  }
  0x6e   :  { %787 = vmatpush2.bf16.msra.mxu1 %v2832_v0 }
  0xf0   :  { %v301_v6 = vpop.f32.mrf.mxu0  ;;  %v3187_v7 = vpop.f32.mrf.mxu1 }
  0xf1   :  { %v302_v16 = vadd.f32 %v301_v6, %v3193_v9 }
  0xf2   :  { %v303_v10 = vpop.f32.mrf.mxu0  ;;  %v3195_v11 = vpop.f32.mrf.mxu1 }
  0xf3   :  { %v304_v14 = vadd.f32 %v303_v10, %v3190_v8  ;;  %v460_v29 = vmax.f32 %v302_v16, 0.0  ;;  %v2855_v16 = vld [vmem:[#allocation2 + $0x114] ss:$8 sps:$4 sm:$0xff]  }
  0xf4   :  { %v305_v12 = vpop.f32.mrf.mxu0  ;;  %v3197_v13 = vpop.f32.mrf.mxu1 }
  0xf5   :  { %v306_v15 = vadd.f32 %v305_v12, %v3193_v9  ;;  %v461_v26 = vmax.f32 %v304_v14, 0.0  ;;  %v2850_v12 = vld [vmem:[#allocation2 + $0x120] ss:$8 sps:$4 sm:$0xff]  }
  0xf6   :  { %v307_v17 = vpop.f32.mrf.mxu0  ;;  %v3202_v18 = vpop.f32.mrf.mxu1  ;;  %1257 = vmatpush1.bf16.msra.mxu0 %v2850_v12 }
  0xf7   :  { %v308_v21 = vadd.f32 %v307_v17, %v3190_v8  ;;  %v462_v23 = vmax.f32 %v306_v15, 0.0  ;;  %1258 = vmatprep.subr.bf16.mxu0 %v2855_v16 }
  0xf8   :  { %v311_v24 = vpop.f32.mrf.mxu0  ;;  %v3205_v25 = vpop.f32.mrf.mxu1 }
  0xf9   :  { %v463_v27 = vmax.f32 %v308_v21, 0.0  ;;  %v524_v34 = vpack.c.bf16 %v462_v23, %v460_v29  ;;  %v312_v40 = vadd.f32 %v311_v24, %v3193_v9  ;;  %v2853_v24 = vld [vmem:[#allocation2 + $0x110] ss:$8 sps:$4 sm:$0xff]  }
  0xfa   :  { %v313_v30 = vpop.f32.mrf.mxu0  ;;  %v3207_v31 = vpop.f32.mrf.mxu1  ;;  %1259 = vmatpush1.bf16.msra.mxu0 %v2853_v24 }
  0xfb   :  { %v525_v33 = vpack.c.bf16 %v463_v27, %v461_v26  ;;  %v314_v37 = vadd.f32 %v313_v30, %v3190_v8  ;;  %v464_v50 = vmax.f32 %v312_v40, 0.0  ;;  %1260 = vmatprep.subr.bf16.mxu0 %v2858_v28  ;;  %v2861_v40 = vld [vmem:[#allocation2 + $0x1f4] ss:$8 sps:$4 sm:$0xff]  }
  0xfc   :  { %v315_v35 = vpop.f32.mrf.mxu0  ;;  %v3209_v36 = vpop.f32.mrf.mxu1 }
  0xfd   :  { %v316_v38 = vadd.f32 %v315_v35, %v3193_v9  ;;  %788 = vmatprep.mubr.bf16.mxu1 %v525_v33  ;;  %v465_v47 = vmax.f32 %v314_v37, 0.0  ;;  %v2856_v37 = vld [vmem:[#allocation2 + $0x100] ss:$8 sps:$4 sm:$0xff]  }
  0xfe   :  { %v317_v41 = vpop.f32.mrf.mxu0  ;;  %789 = vmatmul.mubr.bf16.vlgmr.msra.gmra.mxu1 %v524_v34  ;;  %v3215_v46 = vpop.f32.mrf.mxu1  ;;  %1261 = vmatpush1.bf16.msra.mxu0 %v2856_v37 }
  0xff   :  { %v318_v43 = vadd.f32 %v317_v41, %v3190_v8  ;;  %v466_v44 = vmax.f32 %v316_v38, 0.0  ;;  %1262 = vmatprep.subr.bf16.mxu0 %v2861_v40  ;;  %v2871_v40 = vld [vmem:[#allocation2 + $0x1b0] ss:$8 sps:$4 sm:$0xff]  }
 0x100   :  { %v321_v45 = vpop.f32.mrf.mxu0  ;;  %v3217_v56 = vpop.f32.mrf.mxu1 }
 0x101   :  { %v467_v48 = vmax.f32 %v318_v43, 0.0  ;;  %v526_v54 = vpack.c.bf16 %v466_v44, %v464_v50  ;;  %v322_v60 = vadd.f32 %v321_v45, %v3193_v9 }
 0x102   :  { %v323_v51 = vpop.f32.mrf.mxu0  ;;  %v3223_v3 = vpop.f32.mrf.mxu1 }
 0x103   :  { %v527_v53 = vpack.c.bf16 %v467_v48, %v465_v47  ;;  %v324_v57 = vadd.f32 %v323_v51, %v3190_v8  ;;  %v468_v14 = vmax.f32 %v322_v60, 0.0  ;;  %v2859_v48 = vld [vmem:[#allocation2 + $0x1f0] ss:$8 sps:$4 sm:$0xff]   ;;  %v2864_v51 = vld [vmem:[#allocation2 + $0x1e4] ss:$8 sps:$4 sm:$0xff]  }
 0x104   :  { %v325_v55 = vpop.f32.mrf.mxu0  ;;  %v3225_v21 = vpop.f32.mrf.mxu1  ;;  %1263 = vmatpush2.bf16.msra.mxu0 %v2859_v48 }
 0x105   :  { %v326_v58 = vadd.f32 %v325_v55, %v3193_v9  ;;  %798 = vmatprep.mubr.bf16.mxu1 %v527_v53  ;;  %v469_v6 = vmax.f32 %v324_v57, 0.0  ;;  %1264 = vmatprep.subr.bf16.mxu0 %v2864_v51 }
 0x106   :  { %v327_v61 = vpop.f32.mrf.mxu0  ;;  %799 = vmatmul.mubr.bf16.gmra.mxu1 %v526_v54  ;;  %v3231_v33 = vpop.f32.mrf.mxu1 }
 0x107   :  { %v328_v63 = vadd.f32 %v327_v61, %v3190_v8  ;;  %v470_v0 = vmax.f32 %v326_v58, 0.0 }
 0x108   :  { %v331_v1 = vpop.f32.mrf.mxu0  ;;  %v3233_v44 = vpop.f32.mrf.mxu1  ;;  %1265 = vmatpush2.bf16.msra.mxu0 %v2862_v59 }
 0x109   :  { %v471_v10 = vmax.f32 %v328_v63, 0.0  ;;  %v528_v19 = vpack.c.bf16 %v470_v0, %v468_v14  ;;  %v332_v26 = vadd.f32 %v331_v1, %v3193_v9  ;;  %v2865_v14 = vld [vmem:[#allocation2 + $0x1d0] ss:$8 sps:$4 sm:$0xff]   ;;  %1266 = vmatprep.subr.bf16.mxu0 %v2867_v62 }
 0x10a   :  { %v333_v15 = vpop.f32.mrf.mxu0  ;;  %v3239_v55 = vpop.f32.mrf.mxu1 }
 0x10b   :  { %v529_v17 = vpack.c.bf16 %v471_v10, %v469_v6  ;;  %v334_v22 = vadd.f32 %v333_v15, %v3190_v8  ;;  %v472_v38 = vmax.f32 %v332_v26, 0.0 }
 0x10c   :  { %v335_v20 = vpop.f32.mrf.mxu0  ;;  %v3241_v6 = vpop.f32.mrf.mxu1  ;;  %1267 = vmatpush2.bf16.msra.mxu0 %v2865_v14 }
 0x10d   :  { %v336_v23 = vadd.f32 %v335_v20, %v3193_v9  ;;  %808 = vmatprep.mubr.bf16.mxu1 %v529_v17  ;;  %v473_v34 = vmax.f32 %v334_v22, 0.0  ;;  %v2870_v17 = vld [vmem:[#allocation2 + $0x1c4] ss:$8 sps:$4 sm:$0xff]  }
 0x10e   :  { %v337_v27 = vpop.f32.mrf.mxu0  ;;  %809 = vmatmul.mubr.bf16.gmra.mxu1 %v528_v19  ;;  %1268 = vmatprep.subr.bf16.mxu0 %v2870_v17  ;;  %v394_v17 = vadd.f32 %v3207_v31, %v3190_v8 }
 0x10f   :  { %v338_v29 = vadd.f32 %v337_v27, %v3190_v8  ;;  %v474_v30 = vmax.f32 %v336_v23, 0.0  ;;  %v3247_v23 = vpop.f32.mrf.mxu1  ;;  %v2868_v27 = vld [vmem:[#allocation2 + $0x1c0] ss:$8 sps:$4 sm:$0xff]  }
 0x110   :  { %v341_v32 = vpop.f32.mrf.mxu0  ;;  %1269 = vmatpush2.bf16.msra.mxu0 %v2868_v27  ;;  %v386_v27 = vadd.f32 %v3197_v13, %v3193_v9  ;;  %v392_v13 = vadd.f32 %v3205_v25, %v3193_v9  ;;  %v414_v25 = vadd.f32 %v3239_v55, %v3190_v8 }
 0x111   :  { %v475_v35 = vmax.f32 %v338_v29, 0.0  ;;  %v530_v42 = vpack.c.bf16 %v474_v30, %v472_v38  ;;  %v342_v49 = vadd.f32 %v341_v32, %v3193_v9  ;;  %v2873_v30 = vld [vmem:[#allocation2 + $0x1b4] ss:$8 sps:$4 sm:$0xff]   ;;  %v3249_v37 = vpop.f32.mrf.mxu1 }
 0x112   :  { %v343_v39 = vpop.f32.mrf.mxu0  ;;  %1270 = vmatprep.subr.bf16.mxu0 %v2873_v30 }
 0x113   :  { %v531_v41 = vpack.c.bf16 %v475_v35, %v473_v34  ;;  %v344_v45 = vadd.f32 %v343_v39, %v3190_v8  ;;  %v476_v60 = vmax.f32 %v342_v49, 0.0  ;;  %v3255_v48 = vpop.f32.mrf.mxu1 }
 0x114   :  { %v345_v43 = vpop.f32.mrf.mxu0  ;;  %1271 = vmatpush2.bf16.msra.mxu0 %v2871_v40 }
 0x115   :  { %v346_v47 = vadd.f32 %v345_v43, %v3193_v9  ;;  %818 = vmatprep.mubr.bf16.mxu1 %v531_v41  ;;  %v477_v57 = vmax.f32 %v344_v45, 0.0 }
 0x116   :  { %v347_v50 = vpop.f32.mrf.mxu0  ;;  %819 = vmatmul.mubr.bf16.gmra.mxu1 %v530_v42 }
 0x117   :  { %v348_v52 = vadd.f32 %v347_v50, %v3190_v8  ;;  %v478_v53 = vmax.f32 %v346_v47, 0.0 }
 0x118   :  { %v351_v54 = vpop.f32.mrf.mxu0 }
 0x119   :  { %v479_v58 = vmax.f32 %v348_v52, 0.0  ;;  %v532_v0 = vpack.c.bf16 %v478_v53, %v476_v60  ;;  %v352_v15 = vadd.f32 %v351_v54, %v3193_v9  ;;  %v384_v53 = vadd.f32 %v3195_v11, %v3190_v8  ;;  %v3261_v60 = vpop.f32.mrf.mxu1 }
 0x11a   :  { %v353_v61 = vpop.f32.mrf.mxu0 }
 0x11b   :  { %v533_v63 = vpack.c.bf16 %v479_v58, %v477_v57  ;;  %v354_v10 = vadd.f32 %v353_v61, %v3190_v8  ;;  %v480_v28 = vmax.f32 %v352_v15, 0.0  ;;  %v388_v57 = vadd.f32 %v3202_v18, %v3190_v8  ;;  %v427_v14 = vpop.f32.mrf.mxu1 }
 0x11c   :  { %v355_v1 = vpop.f32.mrf.mxu0 }
 0x11d   :  { %v356_v12 = vadd.f32 %v355_v1, %v3193_v9  ;;  %828 = vmatprep.mubr.bf16.mxu1 %v533_v63  ;;  %v481_v24 = vmax.f32 %v354_v10, 0.0  ;;  %v493_v1 = vmax.f32 %v384_v53, 0.0  ;;  %v495_v10 = vmax.f32 %v388_v57, 0.0 }
 0x11e   :  { %v357_v16 = vpop.f32.mrf.mxu0  ;;  %829 = vmatmul.mubr.bf16.gmra.mxu1 %v532_v0  ;;  %v402_v53 = vadd.f32 %v3217_v56, %v3193_v9  ;;  %v424_v56 = vadd.f32 %v3255_v48, %v3190_v8 }
 0x11f   :  { %v358_v19 = vadd.f32 %v357_v16, %v3190_v8  ;;  %v482_v20 = vmax.f32 %v356_v12, 0.0 }
 0x120   :  { %v361_v22 = vpop.f32.mrf.mxu0 }
 0x121   :  { %v483_v26 = vmax.f32 %v358_v19, 0.0  ;;  %v534_v34 = vpack.c.bf16 %v482_v20, %v480_v28  ;;  %v362_v41 = vadd.f32 %v361_v22, %v3193_v9  ;;  %v541_v20 = vpack.c.bf16 %v495_v10, %v493_v1  ;;  %v3275_v28 = vpop.f32.mrf.mxu1 }
 0x122   :  { %v363_v29 = vpop.f32.mrf.mxu0  ;;  %v398_v22 = vadd.f32 %v3215_v46, %v3190_v8  ;;  %v404_v46 = vadd.f32 %v3223_v3, %v3190_v8  ;;  %v496_v3 = vmax.f32 %v392_v13, 0.0  ;;  %v416_v10 = vadd.f32 %v3241_v6, %v3193_v9 }
 0x123   :  { %v535_v32 = vpack.c.bf16 %v483_v26, %v481_v24  ;;  %v364_v38 = vadd.f32 %v363_v29, %v3190_v8  ;;  %v484_v51 = vmax.f32 %v362_v41, 0.0  ;;  %v382_v24 = vadd.f32 %v3187_v7, %v3193_v9  ;;  %v2876_v41 = vld [vmem:[#allocation2 + $0x1a4] ss:$8 sps:$4 sm:$0xff]  }
 0x124   :  { %v365_v35 = vpop.f32.mrf.mxu0  ;;  %v497_v29 = vmax.f32 %v394_v17, 0.0  ;;  %v499_v30 = vmax.f32 %v398_v22, 0.0  ;;  %v408_v7 = vadd.f32 %v3231_v33, %v3190_v8  ;;  %1272 = vmatprep.subr.bf16.mxu0 %v2876_v41  ;;  %v2879_v33 = vld [vmem:[#allocation2 + $0x194] ss:$8 sps:$4 sm:$0xff]   ;;  %v506_v17 = vmax.f32 %v416_v10, 0.0 }
 0x125   :  { %v366_v39 = vadd.f32 %v365_v35, %v3193_v9  ;;  %838 = vmatprep.mubr.bf16.mxu1 %v535_v32  ;;  %v485_v49 = vmax.f32 %v364_v38, 0.0  ;;  %v492_v31 = vmax.f32 %v382_v24, 0.0  ;;  %v494_v32 = vmax.f32 %v386_v27, 0.0 }
 0x126   :  { %v367_v42 = vpop.f32.mrf.mxu0  ;;  %839 = vmatmul.mubr.bf16.gmra.mxu1 %v534_v34  ;;  %v433_v34 = vpop.f32.mrf.mxu1  ;;  %v543_v35 = vpack.c.bf16 %v499_v30, %v497_v29  ;;  %v426_v6 = vadd.f32 %v3261_v60, %v3193_v9 }
 0x127   :  { %v368_v43 = vadd.f32 %v367_v42, %v3190_v8  ;;  %v486_v45 = vmax.f32 %v366_v39, 0.0  ;;  %v540_v38 = vpack.c.bf16 %v494_v32, %v492_v31  ;;  %v396_v39 = vadd.f32 %v3209_v36, %v3193_v9 }
 0x128   :  { %v371_v47 = vpop.f32.mrf.mxu0  ;;  %v3285_v40 = vpop.f32.mrf.mxu1  ;;  %v501_v42 = vmax.f32 %v404_v46, 0.0  ;;  %v418_v36 = vadd.f32 %v3247_v23, %v3190_v8  ;;  %v434_v48 = vadd.f32 %v433_v34, %v3190_v8  ;;  %v510_v30 = vmax.f32 %v426_v6, 0.0 }
 0x129   :  { %v487_v50 = vmax.f32 %v368_v43, 0.0  ;;  %v536_v58 = vpack.c.bf16 %v486_v45, %v484_v51  ;;  %v372_v63 = vadd.f32 %v371_v47, %v3193_v9  ;;  %v503_v43 = vmax.f32 %v408_v7, 0.0  ;;  %v2874_v45 = vld [vmem:[#allocation2 + $0x1a0] ss:$8 sps:$4 sm:$0xff]   ;;  %v2877_v51 = vld [vmem:[#allocation2 + $0x190] ss:$8 sps:$4 sm:$0xff]  }
 0x12a   :  { %v373_v52 = vpop.f32.mrf.mxu0  ;;  %v498_v47 = vmax.f32 %v396_v39, 0.0  ;;  %1273 = vmatpush2.bf16.msra.mxu0 %v2874_v45  ;;  %v507_v55 = vmax.f32 %v418_v36, 0.0  ;;  %v436_v60 = vadd.f32 %v3285_v40, %v3193_v9 }
 0x12b   :  { %v537_v54 = vpack.c.bf16 %v487_v50, %v485_v49  ;;  %v374_v61 = vadd.f32 %v373_v52, %v3190_v8  ;;  %v488_v16 = vmax.f32 %v372_v63, 0.0  ;;  %v437_v49 = vpop.f32.mrf.mxu1  ;;  %v545_v50 = vpack.c.bf16 %v503_v43, %v501_v42  ;;  %1274 = vmatprep.subr.bf16.mxu0 %v2879_v33 }
 0x12c   :  { %v375_v59 = vpop.f32.mrf.mxu0  ;;  %v542_v52 = vpack.c.bf16 %v498_v47, %v496_v3  ;;  %v514_v41 = vmax.f32 %v436_v60, 0.0 }
 0x12d   :  { %v376_v62 = vadd.f32 %v375_v59, %v3193_v9  ;;  %848 = vmatprep.mubr.bf16.mxu1 %v537_v54  ;;  %v489_v18 = vmax.f32 %v374_v61, 0.0  ;;  %v406_v54 = vadd.f32 %v3225_v21, %v3193_v9  ;;  %v441_v57 = vpop.f32.mrf.mxu1  ;;  %v505_v59 = vmax.f32 %v414_v25, 0.0  ;;  %v2880_v61 = vld [vmem:[#allocation2 + $0x180] ss:$8 sps:$4 sm:$0xff]  }
 0x12e   :  { %v377_v0 = vpop.f32.mrf.mxu0  ;;  %849 = vmatmul.mubr.bf16.gmra.mxu1 %v536_v58  ;;  %1275 = vmatpush2.bf16.msra.mxu0 %v2877_v51  ;;  %v2882_v58 = vld [vmem:[#allocation2 + $0x184] ss:$8 sps:$4 sm:$0xff]   ;;  %v428_v21 = vadd.f32 %v427_v14, %v3190_v8  ;;  %v438_v14 = vadd.f32 %v437_v49, %v3190_v8  ;;  %v442_v49 = vadd.f32 %v441_v57, %v3193_v9  ;;  %v2883_v57 = vld [vmem:[#allocation2 + $0x270] ss:$8 sps:$4 sm:$0xff]  }
 0x12f   :  { %v378_v11 = vadd.f32 %v377_v0, %v3190_v8  ;;  %v490_v12 = vmax.f32 %v376_v62, 0.0  ;;  %v500_v62 = vmax.f32 %v402_v53, 0.0  ;;  %v502_v63 = vmax.f32 %v406_v54, 0.0  ;;  %v443_v23 = vpop.f32.mrf.mxu1  ;;  %1276 = vmatprep.subr.bf16.mxu0 %v2882_v58 }
 0x130   :  { %v547_v0 = vpack.c.bf16 %v507_v55, %v505_v59  ;;  %v515_v27 = vmax.f32 %v438_v14, 0.0  ;;  %v444_v32 = vadd.f32 %v443_v23, %v3190_v8  ;;  %v516_v25 = vmax.f32 %v442_v49, 0.0  ;;  %v2885_v59 = vld [vmem:[#allocation2 + $0x274] ss:$8 sps:$4 sm:$0xff]   ;;  %v2886_v55 = vld [vmem:[#allocation2 + $0x260] ss:$8 sps:$4 sm:$0xff]  }
 0x131   :  { %v491_v15 = vmax.f32 %v378_v11, 0.0  ;;  %v538_v26 = vpack.c.bf16 %v490_v12, %v488_v16  ;;  %v544_v1 = vpack.c.bf16 %v502_v63, %v500_v62  ;;  %v412_v11 = vadd.f32 %v3233_v44, %v3193_v9  ;;  %v445_v12 = vpop.f32.mrf.mxu1  ;;  %1736 = vmatprep.subr.bf16.mxu1 %v2885_v59  ;;  %v2889_v62 = vld [vmem:[#allocation2 + $0x250] ss:$8 sps:$4 sm:$0xff]   ;;  %v2891_v63 = vld [vmem:[#allocation2 + $0x254] ss:$8 sps:$4 sm:$0xff]  }
 0x132   :  { %1277 = vmatpush2.bf16.msra.mxu0 %v2880_v61  ;;  %v422_v44 = vadd.f32 %v3249_v37, %v3193_v9  ;;  %v432_v37 = vadd.f32 %v3275_v28, %v3193_v9  ;;  %v446_v28 = vadd.f32 %v445_v12, %v3193_v9  ;;  %1737 = vmatpush1.bf16.msra.mxu1 %v2883_v57  ;;  %v2888_v61 = vld [vmem:[#allocation2 + $0x264] ss:$8 sps:$4 sm:$0xff]   ;;  %v2892_v23 = vld [vmem:[#allocation2 + $0x240] ss:$8 sps:$4 sm:$0xff]   ;;  %v2901_v14 = vld [vmem:[#allocation2 + $0x210] ss:$8 sps:$4 sm:$0xff]  }
 0x133   :  { %v539_v19 = vpack.c.bf16 %v491_v15, %v489_v18  ;;  %v509_v18 = vmax.f32 %v424_v56, 0.0  ;;  %v511_v15 = vmax.f32 %v428_v21, 0.0  ;;  %v504_v16 = vmax.f32 %v412_v11, 0.0  ;;  %1738 = vmatprep.subr.bf16.mxu1 %v2888_v61  ;;  %v2895_v56 = vld [vmem:[#allocation2 + $0x230] ss:$8 sps:$4 sm:$0xff]  }
 0x134   :  { %v508_v29 = vmax.f32 %v422_v44, 0.0  ;;  %v512_v39 = vmax.f32 %v432_v37, 0.0  ;;  %v590_v21 = vsub.s32 1, %v3174_v2  ;;  %v2906_v44 = vld [vmem:[#allocation2 + $0x204] ss:$8 sps:$4 sm:$0xff]  }
 0x135   :  { %858 = vmatprep.mubr.bf16.mxu1 %v539_v19  ;;  %v447_v19 = vpop.f32.mrf.mxu1  ;;  %v546_v22 = vpack.c.bf16 %v506_v17, %v504_v16  ;;  %v2910_v49 = vld [vmem:[#allocation2 + $0x2e0] ss:$8 sps:$4 sm:$0xff]  }
 0x136   :  { %859 = vmatmul.mubr.bf16.gmra.mxu1 %v538_v26  ;;  %v513_v26 = vmax.f32 %v434_v48, 0.0  ;;  %v448_v46 = vadd.f32 %v447_v19, %v3190_v8  ;;  %v550_v47 = vpack.c.bf16 %v514_v41, %v512_v39  ;;  %v3322_v11 = vrot.slane %v3180_v4, %v590_v21  ;;  %v2912_v39 = vld [vmem:[#allocation2 + $0x2e4] ss:$8 sps:$4 sm:$0xff]  }
 0x137   :  { %868 = vmatprep.mubr.bf16.mxu1 %v541_v20  ;;  %v549_v20 = vpack.c.bf16 %v511_v15, %v509_v18  ;;  %v451_v24 = vpop.f32.mrf.mxu1  ;;  %1739 = vmatpush1.bf16.msra.mxu1 %v2886_v55  ;;  %v3325_v10 = vrot.slane %v3185_v5, %v590_v21  ;;  %v2898_v18 = vld [vmem:[#allocation2 + $0x220] ss:$8 sps:$4 sm:$0xff]   ;;  %v2900_v15 = vld [vmem:[#allocation2 + $0x224] ss:$8 sps:$4 sm:$0xff]  }
 0x138   :  { %v551_v34 = vpack.c.bf16 %v515_v27, %v513_v26  ;;  %v519_v13 = vmax.f32 %v448_v46, 0.0  ;;  %1740 = vmatprep.subr.bf16.mxu1 %v2891_v63  ;;  %v2916_v63 = vld [vmem:[#allocation2 + $0x2c0] ss:$8 sps:$4 sm:$0xff]  }
 0x139   :  { %v453_v31 = vpop.f32.mrf.mxu1 }
 0x13a   :  { %v454_v43 = vadd.f32 %v453_v31, %v3190_v8 }
 0x13b   :  { %v455_v7 = vpop.f32.mrf.mxu1  ;;  %1741 = vmatpush1.bf16.msra.mxu1 %v2889_v62 }
 0x13c   :  { %v521_v40 = vmax.f32 %v454_v43, 0.0  ;;  %v456_v53 = vadd.f32 %v455_v7, %v3193_v9 }
 0x13d   :  { %v457_v42 = vpop.f32.mrf.mxu1 }
 0x13e   :  { %869 = vmatmul.mubr.bf16.gmra.mxu1 %v540_v38  ;;  %v517_v38 = vmax.f32 %v444_v32, 0.0  ;;  %v458_v3 = vadd.f32 %v457_v42, %v3190_v8  ;;  %v522_v54 = vmax.f32 %v456_v53, 0.0  ;;  %v2909_v32 = vld [vmem:[#allocation2 + $0x2f4] ss:$8 sps:$4 sm:$0xff]   ;;  %v2913_v53 = vld [vmem:[#allocation2 + $0x2d0] ss:$8 sps:$4 sm:$0xff]  }
 0x13f   :  { %878 = vmatprep.mubr.bf16.mxu1 %v543_v35  ;;  %v548_v35 = vpack.c.bf16 %v510_v30, %v508_v29  ;;  %v2904_v30 = vld [vmem:[#allocation2 + $0x200] ss:$8 sps:$4 sm:$0xff]  }
 0x140   :  { %v553_v45 = vpack.c.bf16 %v519_v13, %v517_v38  ;;  %v523_v33 = vmax.f32 %v458_v3, 0.0  ;;  %v2907_v38 = vld [vmem:[#allocation2 + $0x2f0] ss:$8 sps:$4 sm:$0xff]  }
 0x142   :  { %v555_v36 = vpack.c.bf16 %v523_v33, %v521_v40  ;;  %v2915_v40 = vld [vmem:[#allocation2 + $0x2d4] ss:$8 sps:$4 sm:$0xff]  }
 0x146   :  { %879 = vmatmul.mubr.bf16.gmra.mxu1 %v542_v52  ;;  %v452_v52 = vadd.f32 %v451_v24, %v3193_v9  ;;  %v2894_v9 = vld [vmem:[#allocation2 + $0x244] ss:$8 sps:$4 sm:$0xff]  }
 0x147   :  { %888 = vmatprep.mubr.bf16.mxu1 %v545_v50  ;;  %v518_v50 = vmax.f32 %v446_v28, 0.0  ;;  %1742 = vmatprep.subr.bf16.mxu1 %v2894_v9  ;;  %v2921_v9 = vld [vmem:[#allocation2 + $0x2b4] ss:$8 sps:$4 sm:$0xff]  }
 0x148   :  { %v520_v8 = vmax.f32 %v452_v52, 0.0  ;;  %1743 = vmatpush1.bf16.msra.mxu1 %v2892_v23 }
 0x149   :  { %v552_v51 = vpack.c.bf16 %v518_v50, %v516_v25 }
 0x14a   :  { %v554_v58 = vpack.c.bf16 %v522_v54, %v520_v8  ;;  %v2918_v54 = vld [vmem:[#allocation2 + $0x2c4] ss:$8 sps:$4 sm:$0xff]  }
 0x14e   :  { %889 = vmatmul.mubr.bf16.gmra.mxu1 %v544_v1 }
 0x14f   :  { %898 = vmatprep.mubr.bf16.mxu1 %v547_v0  ;;  %v2897_v0 = vld [vmem:[#allocation2 + $0x234] ss:$8 sps:$4 sm:$0xff]  }
 0x150   :  { %1744 = vmatprep.subr.bf16.mxu1 %v2897_v0 }
 0x151   :  { %1745 = vmatpush1.bf16.msra.mxu1 %v2895_v56 }
 0x152   :  { %1746 = vmatprep.subr.bf16.mxu1 %v2900_v15  ;;  %v2919_v15 = vld [vmem:[#allocation2 + $0x2b0] ss:$8 sps:$4 sm:$0xff]  }
 0x155   :  { %1747 = vmatpush1.bf16.msra.mxu1 %v2898_v18 }
 0x156   :  { %899 = vmatmul.mubr.bf16.gmra.mxu1 %v546_v22  ;;  %v2903_v22 = vld [vmem:[#allocation2 + $0x214] ss:$8 sps:$4 sm:$0xff]  }
 0x157   :  { %908 = vmatprep.mubr.bf16.mxu1 %v549_v20  ;;  %1748 = vmatprep.subr.bf16.mxu1 %v2903_v22 }
 0x159   :  { %1749 = vmatpush1.bf16.msra.mxu1 %v2901_v14 }
 0x15a   :  { %1750 = vmatprep.subr.bf16.mxu1 %v2906_v44  ;;  %v2922_v44 = vld [vmem:[#allocation2 + $0x2a0] ss:$8 sps:$4 sm:$0xff]  }
 0x15d   :  { %1751 = vmatpush1.bf16.msra.mxu1 %v2904_v30 }
 0x15e   :  { %909 = vmatmul.mubr.bf16.gmra.mxu1 %v548_v35  ;;  %1752 = vmatprep.subr.bf16.mxu1 %v2909_v32  ;;  %v2925_v32 = vld [vmem:[#allocation2 + $0x290] ss:$8 sps:$4 sm:$0xff]  }
 0x15f   :  { %918 = vmatprep.mubr.bf16.mxu1 %v551_v34 }
 0x161   :  { %1753 = vmatpush2.bf16.msra.mxu1 %v2907_v38 }
 0x162   :  { %1754 = vmatprep.subr.bf16.mxu1 %v2912_v39 }
 0x165   :  { %1755 = vmatpush2.bf16.msra.mxu1 %v2910_v49 }
 0x166   :  { %919 = vmatmul.mubr.bf16.gmra.mxu1 %v550_v47  ;;  %1756 = vmatprep.subr.bf16.mxu1 %v2915_v40 }
 0x167   :  { %928 = vmatprep.mubr.bf16.mxu1 %v553_v45 }
 0x169   :  { %1757 = vmatpush2.bf16.msra.mxu1 %v2913_v53 }
 0x16a   :  { %1758 = vmatprep.subr.bf16.mxu1 %v2918_v54 }
 0x16d   :  { %1759 = vmatpush2.bf16.msra.mxu1 %v2916_v63 }
 0x16e   :  { %929 = vmatmul.mubr.bf16.gmra.mxu1 %v552_v51  ;;  %1760 = vmatprep.subr.bf16.mxu1 %v2921_v9 }
 0x16f   :  { %938 = vmatprep.mubr.bf16.mxu1 %v555_v36 }
 0x171   :  { %1761 = vmatpush2.bf16.msra.mxu1 %v2919_v15 }
 0x176   :  { %939 = vmatmul.mubr.bf16.gmra.mxu1 %v554_v58 }
 0x1be   :  { %v790_v1 = vpop.f32.mrf.mxu1 }
 0x1bf   :  { %v791_v48 = vadd.f32 %v790_v1, %v3325_v10 }
 0x1c0   :  { %v792_v12 = vpop.f32.mrf.mxu1 }
 0x1c1   :  { %v793_v17 = vadd.f32 %v792_v12, %v3322_v11  ;;  %v949_v27 = vmax.f32 %v791_v48, 0.0 }
 0x1c2   :  { %v794_v16 = vpop.f32.mrf.mxu1 }
 0x1c3   :  { %v795_v19 = vadd.f32 %v794_v16, %v3325_v10  ;;  %v950_v24 = vmax.f32 %v793_v17, 0.0  ;;  %v2924_v17 = vld [vmem:[#allocation2 + $0x2a4] ss:$8 sps:$4 sm:$0xff]  }
 0x1c4   :  { %v796_v20 = vpop.f32.mrf.mxu1  ;;  %1762 = vmatprep.subr.bf16.mxu1 %v2924_v17 }
 0x1c5   :  { %v797_v4 = vadd.f32 %v796_v20, %v3322_v11  ;;  %v951_v5 = vmax.f32 %v795_v19, 0.0  ;;  %1763 = vmatpush2.bf16.msra.mxu1 %v2922_v44 }
 0x1c6   :  { %v800_v6 = vpop.f32.mrf.mxu1 }
 0x1c7   :  { %v952_v26 = vmax.f32 %v797_v4, 0.0  ;;  %v1013_v34 = vpack.c.bf16 %v951_v5, %v949_v27  ;;  %v801_v60 = vadd.f32 %v800_v6, %v3325_v10  ;;  %v2927_v6 = vld [vmem:[#allocation2 + $0x294] ss:$8 sps:$4 sm:$0xff]  }
 0x1c8   :  { %v802_v29 = vpop.f32.mrf.mxu1  ;;  %1764 = vmatprep.subr.bf16.mxu1 %v2927_v6 }
 0x1c9   :  { %v1014_v31 = vpack.c.bf16 %v952_v26, %v950_v24  ;;  %v803_v35 = vadd.f32 %v802_v29, %v3322_v11  ;;  %v953_v3 = vmax.f32 %v801_v60, 0.0  ;;  %1765 = vmatpush2.bf16.msra.mxu1 %v2925_v32 }
 0x1ca   :  { %v804_v46 = vpop.f32.mrf.mxu1 }
 0x1cb   :  { %v805_v37 = vadd.f32 %v804_v46, %v3325_v10  ;;  %1278 = vmatprep.mubr.bf16.mxu0 %v1014_v31  ;;  %v954_v43 = vmax.f32 %v803_v35, 0.0 }
 0x1cc   :  { %v806_v7 = vpop.f32.mrf.mxu1  ;;  %1279 = vmatmul.mubr.bf16.vlgmr.msra.gmra.mxu0 %v1013_v34 }
 0x1cd   :  { %v807_v13 = vadd.f32 %v806_v7, %v3322_v11  ;;  %v955_v41 = vmax.f32 %v805_v37, 0.0 }
 0x1ce   :  { %v810_v42 = vpop.f32.mrf.mxu1 }
 0x1cf   :  { %v956_v45 = vmax.f32 %v807_v13, 0.0  ;;  %v1015_v33 = vpack.c.bf16 %v955_v41, %v953_v3  ;;  %v811_v51 = vadd.f32 %v810_v42, %v3325_v10 }
 0x1d0   :  { %v812_v47 = vpop.f32.mrf.mxu1 }
 0x1d1   :  { %v1016_v28 = vpack.c.bf16 %v956_v45, %v954_v43  ;;  %v813_v50 = vadd.f32 %v812_v47, %v3322_v11  ;;  %v957_v61 = vmax.f32 %v811_v51, 0.0 }
 0x1d2   :  { %v814_v25 = vpop.f32.mrf.mxu1 }
 0x1d3   :  { %v815_v36 = vadd.f32 %v814_v25, %v3325_v10  ;;  %1288 = vmatprep.mubr.bf16.mxu0 %v1016_v28  ;;  %v958_v59 = vmax.f32 %v813_v50, 0.0 }
 0x1d4   :  { %v816_v52 = vpop.f32.mrf.mxu1  ;;  %1289 = vmatmul.mubr.bf16.gmra.mxu0 %v1015_v33 }
 0x1d5   :  { %v817_v8 = vadd.f32 %v816_v52, %v3322_v11  ;;  %v959_v58 = vmax.f32 %v815_v36, 0.0 }
 0x1d6   :  { %v820_v57 = vpop.f32.mrf.mxu1 }
 0x1d7   :  { %v960_v55 = vmax.f32 %v817_v8, 0.0  ;;  %v1017_v56 = vpack.c.bf16 %v959_v58, %v957_v61  ;;  %v821_v12 = vadd.f32 %v820_v57, %v3325_v10 }
 0x1d8   :  { %v822_v62 = vpop.f32.mrf.mxu1 }
 0x1d9   :  { %v1018_v23 = vpack.c.bf16 %v960_v55, %v958_v59  ;;  %v823_v21 = vadd.f32 %v822_v62, %v3322_v11  ;;  %v961_v22 = vmax.f32 %v821_v12, 0.0 }
 0x1da   :  { %v824_v0 = vpop.f32.mrf.mxu1 }
 0x1db   :  { %v825_v1 = vadd.f32 %v824_v0, %v3325_v10  ;;  %1298 = vmatprep.mubr.bf16.mxu0 %v1018_v23  ;;  %v962_v20 = vmax.f32 %v823_v21, 0.0 }
 0x1dc   :  { %v826_v18 = vpop.f32.mrf.mxu1  ;;  %1299 = vmatmul.mubr.bf16.gmra.mxu0 %v1017_v56 }
 0x1dd   :  { %v827_v16 = vadd.f32 %v826_v18, %v3322_v11  ;;  %v963_v19 = vmax.f32 %v825_v1, 0.0 }
 0x1de   :  { %v830_v48 = vpop.f32.mrf.mxu1 }
 0x1df   :  { %v964_v14 = vmax.f32 %v827_v16, 0.0  ;;  %v1019_v24 = vpack.c.bf16 %v963_v19, %v961_v22  ;;  %v831_v30 = vadd.f32 %v830_v48, %v3325_v10 }
 0x1e0   :  { %v832_v4 = vpop.f32.mrf.mxu1 }
 0x1e1   :  { %v1020_v5 = vpack.c.bf16 %v964_v14, %v962_v20  ;;  %v833_v27 = vadd.f32 %v832_v4, %v3322_v11  ;;  %v965_v7 = vmax.f32 %v831_v30, 0.0 }
 0x1e2   :  { %v834_v26 = vpop.f32.mrf.mxu1 }
 0x1e3   :  { %v835_v29 = vadd.f32 %v834_v26, %v3325_v10  ;;  %1308 = vmatprep.mubr.bf16.mxu0 %v1020_v5  ;;  %v966_v37 = vmax.f32 %v833_v27, 0.0 }
 0x1e4   :  { %v836_v31 = vpop.f32.mrf.mxu1  ;;  %1309 = vmatmul.mubr.bf16.gmra.mxu0 %v1019_v24 }
 0x1e5   :  { %v837_v34 = vadd.f32 %v836_v31, %v3322_v11  ;;  %v967_v46 = vmax.f32 %v835_v29, 0.0 }
 0x1e6   :  { %v840_v35 = vpop.f32.mrf.mxu1 }
 0x1e7   :  { %v968_v60 = vmax.f32 %v837_v34, 0.0  ;;  %v1021_v39 = vpack.c.bf16 %v967_v46, %v965_v7  ;;  %v841_v45 = vadd.f32 %v840_v35, %v3325_v10 }
 0x1e8   :  { %v842_v38 = vpop.f32.mrf.mxu1 }
 0x1e9   :  { %v1022_v13 = vpack.c.bf16 %v968_v60, %v966_v37  ;;  %v843_v42 = vadd.f32 %v842_v38, %v3322_v11  ;;  %v969_v25 = vmax.f32 %v841_v45, 0.0 }
 0x1ea   :  { %v844_v41 = vpop.f32.mrf.mxu1 }
 0x1eb   :  { %v845_v43 = vadd.f32 %v844_v41, %v3325_v10  ;;  %1318 = vmatprep.mubr.bf16.mxu0 %v1022_v13  ;;  %v970_v40 = vmax.f32 %v843_v42, 0.0 }
 0x1ec   :  { %v846_v3 = vpop.f32.mrf.mxu1  ;;  %1319 = vmatmul.mubr.bf16.gmra.mxu0 %v1021_v39 }
 0x1ed   :  { %v847_v47 = vadd.f32 %v846_v3, %v3322_v11  ;;  %v971_v49 = vmax.f32 %v845_v43, 0.0 }
 0x1ee   :  { %v850_v28 = vpop.f32.mrf.mxu1 }
 0x1ef   :  { %v972_v33 = vmax.f32 %v847_v47, 0.0  ;;  %v1023_v51 = vpack.c.bf16 %v971_v49, %v969_v25  ;;  %v851_v54 = vadd.f32 %v850_v28, %v3325_v10 }
 0x1f0   :  { %v852_v50 = vpop.f32.mrf.mxu1 }
 0x1f1   :  { %v1024_v36 = vpack.c.bf16 %v972_v33, %v970_v40  ;;  %v853_v53 = vadd.f32 %v852_v50, %v3322_v11  ;;  %v973_v63 = vmax.f32 %v851_v54, 0.0 }
 0x1f2   :  { %v854_v52 = vpop.f32.mrf.mxu1 }
 0x1f3   :  { %v855_v8 = vadd.f32 %v854_v52, %v3325_v10  ;;  %1328 = vmatprep.mubr.bf16.mxu0 %v1024_v36  ;;  %v974_v61 = vmax.f32 %v853_v53, 0.0  ;;  %v2930_v52 = vld [vmem:[#allocation2 + $0x284] ss:$8 sps:$4 sm:$0xff]  }
 0x1f4   :  { %v856_v58 = vpop.f32.mrf.mxu1  ;;  %1329 = vmatmul.mubr.bf16.gmra.mxu0 %v1023_v51  ;;  %1766 = vmatprep.subr.bf16.mxu1 %v2930_v52 }
 0x1f5   :  { %v857_v57 = vadd.f32 %v856_v58, %v3322_v11  ;;  %v975_v59 = vmax.f32 %v855_v8, 0.0  ;;  %v2928_v8 = vld [vmem:[#allocation2 + $0x280] ss:$8 sps:$4 sm:$0xff]  }
 0x1f6   :  { %v860_v55 = vpop.f32.mrf.mxu1  ;;  %1767 = vmatpush2.bf16.msra.mxu1 %v2928_v8 }
 0x1f7   :  { %v976_v62 = vmax.f32 %v857_v57, 0.0  ;;  %v1025_v56 = vpack.c.bf16 %v975_v59, %v973_v63  ;;  %v861_v12 = vadd.f32 %v860_v55, %v3325_v10 }
 0x1f8   :  { %v862_v23 = vpop.f32.mrf.mxu1 }
 0x1f9   :  { %v1026_v9 = vpack.c.bf16 %v976_v62, %v974_v61  ;;  %v863_v21 = vadd.f32 %v862_v23, %v3322_v11  ;;  %v977_v20 = vmax.f32 %v861_v12, 0.0 }
 0x1fa   :  { %v864_v0 = vpop.f32.mrf.mxu1 }
 0x1fb   :  { %v865_v1 = vadd.f32 %v864_v0, %v3325_v10  ;;  %1338 = vmatprep.mubr.bf16.mxu0 %v1026_v9  ;;  %v978_v19 = vmax.f32 %v863_v21, 0.0 }
 0x1fc   :  { %v866_v18 = vpop.f32.mrf.mxu1  ;;  %1339 = vmatmul.mubr.bf16.gmra.mxu0 %v1025_v56 }
 0x1fd   :  { %v867_v15 = vadd.f32 %v866_v18, %v3322_v11  ;;  %v979_v16 = vmax.f32 %v865_v1, 0.0 }
 0x1fe   :  { %v870_v17 = vpop.f32.mrf.mxu1 }
 0x1ff   :  { %v980_v48 = vmax.f32 %v867_v15, 0.0  ;;  %v1027_v4 = vpack.c.bf16 %v979_v16, %v977_v20  ;;  %v871_v24 = vadd.f32 %v870_v17, %v3325_v10 }
 0x200   :  { %v872_v14 = vpop.f32.mrf.mxu1 }
 0x201   :  { %v1028_v22 = vpack.c.bf16 %v980_v48, %v978_v19  ;;  %v873_v5 = vadd.f32 %v872_v14, %v3322_v11  ;;  %v981_v34 = vmax.f32 %v871_v24, 0.0 }
 0x202   :  { %v874_v44 = vpop.f32.mrf.mxu1 }
 0x203   :  { %v875_v6 = vadd.f32 %v874_v44, %v3325_v10  ;;  %1348 = vmatprep.mubr.bf16.mxu0 %v1028_v22  ;;  %v982_v31 = vmax.f32 %v873_v5, 0.0 }
 0x204   :  { %v876_v26 = vpop.f32.mrf.mxu1  ;;  %1349 = vmatmul.mubr.bf16.gmra.mxu0 %v1027_v4 }
 0x205   :  { %v877_v27 = vadd.f32 %v876_v26, %v3322_v11  ;;  %v983_v29 = vmax.f32 %v875_v6, 0.0 }
 0x206   :  { %v880_v30 = vpop.f32.mrf.mxu1 }
 0x207   :  { %v984_v32 = vmax.f32 %v877_v27, 0.0  ;;  %v1029_v37 = vpack.c.bf16 %v983_v29, %v981_v34  ;;  %v881_v13 = vadd.f32 %v880_v30, %v3325_v10 }
 0x208   :  { %v882_v46 = vpop.f32.mrf.mxu1 }
 0x209   :  { %v1030_v35 = vpack.c.bf16 %v984_v32, %v982_v31  ;;  %v883_v7 = vadd.f32 %v882_v46, %v3322_v11  ;;  %v985_v47 = vmax.f32 %v881_v13, 0.0 }
 0x20a   :  { %v884_v60 = vpop.f32.mrf.mxu1 }
 0x20b   :  { %v885_v38 = vadd.f32 %v884_v60, %v3325_v10  ;;  %1358 = vmatprep.mubr.bf16.mxu0 %v1030_v35  ;;  %v986_v45 = vmax.f32 %v883_v7, 0.0 }
 0x20c   :  { %v886_v39 = vpop.f32.mrf.mxu1  ;;  %1359 = vmatmul.mubr.bf16.gmra.mxu0 %v1029_v37 }
 0x20d   :  { %v887_v41 = vadd.f32 %v886_v39, %v3322_v11  ;;  %v987_v42 = vmax.f32 %v885_v38, 0.0 }
 0x20e   :  { %v890_v43 = vpop.f32.mrf.mxu1 }
 0x20f   :  { %v988_v3 = vmax.f32 %v887_v41, 0.0  ;;  %v1031_v40 = vpack.c.bf16 %v987_v42, %v985_v47  ;;  %v891_v36 = vadd.f32 %v890_v43, %v3325_v10 }
 0x210   :  { %v892_v49 = vpop.f32.mrf.mxu1 }
 0x211   :  { %v1032_v28 = vpack.c.bf16 %v988_v3, %v986_v45  ;;  %v893_v25 = vadd.f32 %v892_v49, %v3322_v11  ;;  %v989_v55 = vmax.f32 %v891_v36, 0.0 }
 0x212   :  { %v894_v33 = vpop.f32.mrf.mxu1 }
 0x213   :  { %v895_v50 = vadd.f32 %v894_v33, %v3325_v10  ;;  %1368 = vmatprep.mubr.bf16.mxu0 %v1032_v28  ;;  %v990_v57 = vmax.f32 %v893_v25, 0.0 }
 0x214   :  { %v896_v51 = vpop.f32.mrf.mxu1  ;;  %1369 = vmatmul.mubr.bf16.gmra.mxu0 %v1031_v40 }
 0x215   :  { %v897_v53 = vadd.f32 %v896_v51, %v3322_v11  ;;  %v991_v54 = vmax.f32 %v895_v50, 0.0 }
 0x216   :  { %v900_v58 = vpop.f32.mrf.mxu1 }
 0x217   :  { %v992_v59 = vmax.f32 %v897_v53, 0.0  ;;  %v1033_v63 = vpack.c.bf16 %v991_v54, %v989_v55  ;;  %v901_v0 = vadd.f32 %v900_v58, %v3325_v10 }
 0x218   :  { %v902_v61 = vpop.f32.mrf.mxu1 }
 0x219   :  { %v1034_v62 = vpack.c.bf16 %v992_v59, %v990_v57  ;;  %v903_v9 = vadd.f32 %v902_v61, %v3322_v11  ;;  %v993_v17 = vmax.f32 %v901_v0, 0.0 }
 0x21a   :  { %v904_v23 = vpop.f32.mrf.mxu1 }
 0x21b   :  { %v905_v56 = vadd.f32 %v904_v23, %v3325_v10  ;;  %1378 = vmatprep.mubr.bf16.mxu0 %v1034_v62  ;;  %v994_v15 = vmax.f32 %v903_v9, 0.0 }
 0x21c   :  { %v906_v21 = vpop.f32.mrf.mxu1  ;;  %1379 = vmatmul.mubr.bf16.gmra.mxu0 %v1033_v63 }
 0x21d   :  { %v907_v1 = vadd.f32 %v906_v21, %v3322_v11  ;;  %v995_v12 = vmax.f32 %v905_v56, 0.0 }
 0x21e   :  { %v910_v18 = vpop.f32.mrf.mxu1 }
 0x21f   :  { %v996_v16 = vmax.f32 %v907_v1, 0.0  ;;  %v1035_v20 = vpack.c.bf16 %v995_v12, %v993_v17  ;;  %v911_v44 = vadd.f32 %v910_v18, %v3325_v10  ;;  %v2931_v18 = vld [vmem:[#allocation2 + $0x370] ss:$8 sps:$4 sm:$0xff]   ;;  %v2936_v17 = vld [vmem:[#allocation2 + $0x364] ss:$8 sps:$4 sm:$0xff]  }
 0x220   :  { %v912_v19 = vpop.f32.mrf.mxu1 }
 0x221   :  { %v1036_v48 = vpack.c.bf16 %v996_v16, %v994_v15  ;;  %v913_v22 = vadd.f32 %v912_v19, %v3322_v11  ;;  %v997_v30 = vmax.f32 %v911_v44, 0.0  ;;  %v2933_v15 = vld [vmem:[#allocation2 + $0x374] ss:$8 sps:$4 sm:$0xff]   ;;  %v2934_v16 = vld [vmem:[#allocation2 + $0x360] ss:$8 sps:$4 sm:$0xff]  }
 0x222   :  { %v914_v14 = vpop.f32.mrf.mxu1  ;;  %2226 = vmatprep.subr.bf16.mxu0 %v2933_v15  ;;  %v2939_v19 = vld [vmem:[#allocation2 + $0x354] ss:$8 sps:$4 sm:$0xff]   ;;  %v3395_v44 = vld [vmem:[%s3624_s3 + $0x8] sm:$0x1f] }
 0x223   :  { %v915_v4 = vadd.f32 %v914_v14, %v3325_v10  ;;  %1388 = vmatprep.mubr.bf16.mxu0 %v1036_v48  ;;  %v998_v27 = vmax.f32 %v913_v22, 0.0  ;;  %2227 = vmatpush1.bf16.msra.mxu0 %v2931_v18  ;;  %v2942_v48 = vld [vmem:[#allocation2 + $0x344] ss:$8 sps:$4 sm:$0xff]   ;;  %v2945_v14 = vld [vmem:[#allocation2 + $0x334] ss:$8 sps:$4 sm:$0xff]   ;;  %v1080_v22 = vsub.s32 2, %v3174_v2 }
 0x224   :  { %v916_v5 = vpop.f32.mrf.mxu1  ;;  %1389 = vmatmul.mubr.bf16.gmra.mxu0 %v1035_v20  ;;  %2228 = vmatprep.subr.bf16.mxu0 %v2936_v17  ;;  %v2943_v20 = vld [vmem:[#allocation2 + $0x330] ss:$8 sps:$4 sm:$0xff]   ;;  %v2966_v18 = vld [vmem:[#allocation2 + $0x3c4] ss:$8 sps:$4 sm:$0xff]  }
 0x225   :  { %v917_v6 = vadd.f32 %v916_v5, %v3322_v11  ;;  %v999_v24 = vmax.f32 %v915_v4, 0.0  ;;  %v3398_v5 = vrot.slane %v3395_v44, %v1080_v22 }
 0x226   :  { %v920_v26 = vpop.f32.mrf.mxu1 }
 0x227   :  { %v1000_v29 = vmax.f32 %v917_v6, 0.0  ;;  %v1037_v34 = vpack.c.bf16 %v999_v24, %v997_v30  ;;  %v921_v60 = vadd.f32 %v920_v26, %v3325_v10  ;;  %2229 = vmatpush1.bf16.msra.mxu0 %v2934_v16  ;;  %v3403_v6 = vld [vmem:[%s3624_s3] sm:$0x1f] }
 0x228   :  { %v922_v31 = vpop.f32.mrf.mxu1  ;;  %2230 = vmatprep.subr.bf16.mxu0 %v2939_v19  ;;  %v3406_v24 = vrot.slane %v3403_v6, %v1080_v22 }
 0x229   :  { %v1038_v32 = vpack.c.bf16 %v1000_v29, %v998_v27  ;;  %v923_v35 = vadd.f32 %v922_v31, %v3322_v11  ;;  %v1001_v43 = vmax.f32 %v921_v60, 0.0  ;;  %v2946_v27 = vld [vmem:[#allocation2 + $0x320] ss:$8 sps:$4 sm:$0xff]   ;;  %v2948_v29 = vld [vmem:[#allocation2 + $0x324] ss:$8 sps:$4 sm:$0xff]  }
 0x22a   :  { %v924_v46 = vpop.f32.mrf.mxu1 }
 0x22b   :  { %v925_v37 = vadd.f32 %v924_v46, %v3325_v10  ;;  %1398 = vmatprep.mubr.bf16.mxu0 %v1038_v32  ;;  %v1002_v41 = vmax.f32 %v923_v35, 0.0  ;;  %v2949_v35 = vld [vmem:[#allocation2 + $0x310] ss:$8 sps:$4 sm:$0xff]  }
 0x22c   :  { %v926_v7 = vpop.f32.mrf.mxu1  ;;  %1399 = vmatmul.mubr.bf16.gmra.mxu0 %v1037_v34 }
 0x22d   :  { %v927_v38 = vadd.f32 %v926_v7, %v3322_v11  ;;  %v1003_v13 = vmax.f32 %v925_v37, 0.0  ;;  %v2951_v37 = vld [vmem:[#allocation2 + $0x314] ss:$8 sps:$4 sm:$0xff]   ;;  %v2954_v7 = vld [vmem:[#allocation2 + $0x304] ss:$8 sps:$4 sm:$0xff]  }
 0x22e   :  { %v930_v39 = vpop.f32.mrf.mxu1 }
 0x22f   :  { %v1004_v42 = vmax.f32 %v927_v38, 0.0  ;;  %v1039_v47 = vpack.c.bf16 %v1003_v13, %v1001_v43  ;;  %v931_v33 = vadd.f32 %v930_v39, %v3325_v10 }
 0x230   :  { %v932_v45 = vpop.f32.mrf.mxu1 }
 0x231   :  { %v1040_v3 = vpack.c.bf16 %v1004_v42, %v1002_v41  ;;  %v933_v28 = vadd.f32 %v932_v45, %v3322_v11  ;;  %v1005_v8 = vmax.f32 %v931_v33, 0.0  ;;  %v2952_v45 = vld [vmem:[#allocation2 + $0x300] ss:$8 sps:$4 sm:$0xff]  }
 0x232   :  { %v934_v49 = vpop.f32.mrf.mxu1 }
 0x233   :  { %v935_v40 = vadd.f32 %v934_v49, %v3325_v10  ;;  %1408 = vmatprep.mubr.bf16.mxu0 %v1040_v3  ;;  %v1006_v52 = vmax.f32 %v933_v28, 0.0 }
 0x234   :  { %v936_v25 = vpop.f32.mrf.mxu1  ;;  %1409 = vmatmul.mubr.bf16.gmra.mxu0 %v1039_v47  ;;  %v2957_v47 = vld [vmem:[#allocation2 + $0x3f4] ss:$8 sps:$4 sm:$0xff]  }
 0x235   :  { %v937_v50 = vadd.f32 %v936_v25, %v3322_v11  ;;  %v1007_v36 = vmax.f32 %v935_v40, 0.0 }
 0x236   :  { %v940_v51 = vpop.f32.mrf.mxu1 }
 0x237   :  { %v1008_v53 = vmax.f32 %v937_v50, 0.0  ;;  %v1041_v57 = vpack.c.bf16 %v1007_v36, %v1005_v8  ;;  %v941_v62 = vadd.f32 %v940_v51, %v3325_v10  ;;  %v2955_v36 = vld [vmem:[#allocation2 + $0x3f0] ss:$8 sps:$4 sm:$0xff]  }
 0x238   :  { %v942_v54 = vpop.f32.mrf.mxu1 }
 0x239   :  { %v1042_v58 = vpack.c.bf16 %v1008_v53, %v1006_v52  ;;  %v943_v55 = vadd.f32 %v942_v54, %v3322_v11  ;;  %v1009_v21 = vmax.f32 %v941_v62, 0.0  ;;  %v2960_v52 = vld [vmem:[#allocation2 + $0x3e4] ss:$8 sps:$4 sm:$0xff]   ;;  %v2963_v62 = vld [vmem:[#allocation2 + $0x3d4] ss:$8 sps:$4 sm:$0xff]  }
 0x23a   :  { %v944_v59 = vpop.f32.mrf.mxu1 }
 0x23b   :  { %v945_v61 = vadd.f32 %v944_v59, %v3325_v10  ;;  %1418 = vmatprep.mubr.bf16.mxu0 %v1042_v58  ;;  %v1010_v56 = vmax.f32 %v943_v55, 0.0  ;;  %v2937_v10 = vld [vmem:[#allocation2 + $0x350] ss:$8 sps:$4 sm:$0xff]   ;;  %v2958_v55 = vld [vmem:[#allocation2 + $0x3e0] ss:$8 sps:$4 sm:$0xff]  }
 0x23c   :  { %v946_v63 = vpop.f32.mrf.mxu1  ;;  %1419 = vmatmul.mubr.bf16.gmra.mxu0 %v1041_v57 }
 0x23d   :  { %v947_v23 = vadd.f32 %v946_v63, %v3322_v11  ;;  %v1011_v9 = vmax.f32 %v945_v61, 0.0  ;;  %2231 = vmatpush1.bf16.msra.mxu0 %v2937_v10  ;;  %v2940_v11 = vld [vmem:[#allocation2 + $0x340] ss:$8 sps:$4 sm:$0xff]  }
 0x23e   :  { %2232 = vmatprep.subr.bf16.mxu0 %v2942_v48  ;;  %v2964_v48 = vld [vmem:[#allocation2 + $0x3c0] ss:$8 sps:$4 sm:$0xff]  }
 0x23f   :  { %v1012_v0 = vmax.f32 %v947_v23, 0.0  ;;  %v1043_v12 = vpack.c.bf16 %v1011_v9, %v1009_v21 }
 0x241   :  { %v1044_v1 = vpack.c.bf16 %v1012_v0, %v1010_v56  ;;  %2233 = vmatpush1.bf16.msra.mxu0 %v2940_v11 }
 0x242   :  { %2234 = vmatprep.subr.bf16.mxu0 %v2945_v14  ;;  %v2969_v14 = vld [vmem:[#allocation2 + $0x3b4] ss:$8 sps:$4 sm:$0xff]  }
 0x243   :  { %1428 = vmatprep.mubr.bf16.mxu0 %v1044_v1  ;;  %v2961_v1 = vld [vmem:[#allocation2 + $0x3d0] ss:$8 sps:$4 sm:$0xff]  }
 0x244   :  { %1429 = vmatmul.mubr.bf16.gmra.mxu0 %v1043_v12 }
 0x245   :  { %2235 = vmatpush1.bf16.msra.mxu0 %v2943_v20 }
 0x246   :  { %2236 = vmatprep.subr.bf16.mxu0 %v2948_v29 }
 0x249   :  { %2237 = vmatpush1.bf16.msra.mxu0 %v2946_v27 }
 0x24a   :  { %2238 = vmatprep.subr.bf16.mxu0 %v2951_v37 }
 0x24d   :  { %2239 = vmatpush1.bf16.msra.mxu0 %v2949_v35 }
 0x24e   :  { %2240 = vmatprep.subr.bf16.mxu0 %v2954_v7 }
 0x251   :  { %2241 = vmatpush1.bf16.msra.mxu0 %v2952_v45 }
 0x252   :  { %2242 = vmatprep.subr.bf16.mxu0 %v2957_v47 }
 0x255   :  { %2243 = vmatpush2.bf16.msra.mxu0 %v2955_v36 }
 0x256   :  { %2244 = vmatprep.subr.bf16.mxu0 %v2960_v52 }
 0x259   :  { %2245 = vmatpush2.bf16.msra.mxu0 %v2958_v55 }
 0x25a   :  { %2246 = vmatprep.subr.bf16.mxu0 %v2963_v62 }
 0x25d   :  { %2247 = vmatpush2.bf16.msra.mxu0 %v2961_v1 }
 0x25e   :  { %2248 = vmatprep.subr.bf16.mxu0 %v2966_v18 }
 0x261   :  { %2249 = vmatpush2.bf16.msra.mxu0 %v2964_v48 }
 0x262   :  { %2250 = vmatprep.subr.bf16.mxu0 %v2969_v14 }
 0x28c   :  { %v1280_v4 = vpop.f32.mrf.mxu0 }
 0x28d   :  { %v1281_v34 = vadd.f32 %v1280_v4, %v3406_v24 }
 0x28e   :  { %v1282_v26 = vpop.f32.mrf.mxu0 }
 0x28f   :  { %v1283_v31 = vadd.f32 %v1282_v26, %v3398_v5  ;;  %v1439_v42 = vmax.f32 %v1281_v34, 0.0  ;;  %v2972_v34 = vld [vmem:[#allocation2 + $0x3a4] ss:$8 sps:$4 sm:$0xff]  }
 0x290   :  { %v1284_v30 = vpop.f32.mrf.mxu0 }
 0x291   :  { %v1285_v32 = vadd.f32 %v1284_v30, %v3406_v24  ;;  %v1440_v39 = vmax.f32 %v1283_v31, 0.0  ;;  %v2967_v31 = vld [vmem:[#allocation2 + $0x3b0] ss:$8 sps:$4 sm:$0xff]  }
 0x292   :  { %v1286_v46 = vpop.f32.mrf.mxu0  ;;  %2251 = vmatpush2.bf16.msra.mxu0 %v2967_v31 }
 0x293   :  { %v1287_v60 = vadd.f32 %v1286_v46, %v3398_v5  ;;  %v1441_v38 = vmax.f32 %v1285_v32, 0.0  ;;  %2252 = vmatprep.subr.bf16.mxu0 %v2972_v34 }
 0x294   :  { %v1290_v13 = vpop.f32.mrf.mxu0 }
 0x295   :  { %v1442_v41 = vmax.f32 %v1287_v60, 0.0  ;;  %v1503_v49 = vpack.c.bf16 %v1441_v38, %v1439_v42  ;;  %v1291_v25 = vadd.f32 %v1290_v13, %v3406_v24  ;;  %v2970_v13 = vld [vmem:[#allocation2 + $0x3a0] ss:$8 sps:$4 sm:$0xff]  }
 0x296   :  { %v1292_v43 = vpop.f32.mrf.mxu0  ;;  %2253 = vmatpush2.bf16.msra.mxu0 %v2970_v13 }
 0x297   :  { %v1504_v3 = vpack.c.bf16 %v1442_v41, %v1440_v39  ;;  %v1293_v40 = vadd.f32 %v1292_v43, %v3398_v5  ;;  %v1443_v57 = vmax.f32 %v1291_v25, 0.0  ;;  %v2975_v41 = vld [vmem:[#allocation2 + $0x394] ss:$8 sps:$4 sm:$0xff]  }
 0x298   :  { %v1294_v28 = vpop.f32.mrf.mxu0  ;;  %2254 = vmatprep.subr.bf16.mxu0 %v2975_v41 }
 0x299   :  { %v1295_v33 = vadd.f32 %v1294_v28, %v3406_v24  ;;  %1768 = vmatprep.mubr.bf16.mxu1 %v1504_v3  ;;  %v1444_v54 = vmax.f32 %v1293_v40, 0.0  ;;  %v2973_v28 = vld [vmem:[#allocation2 + $0x390] ss:$8 sps:$4 sm:$0xff]  }
 0x29a   :  { %v1296_v50 = vpop.f32.mrf.mxu0  ;;  %1769 = vmatmul.mubr.bf16.vlgmr.msra.gmra.mxu1 %v1503_v49  ;;  %2255 = vmatpush2.bf16.msra.mxu0 %v2973_v28 }
 0x29b   :  { %v1297_v51 = vadd.f32 %v1296_v50, %v3398_v5  ;;  %v1445_v53 = vmax.f32 %v1295_v33, 0.0 }
 0x29c   :  { %v1300_v8 = vpop.f32.mrf.mxu0 }
 0x29d   :  { %v1446_v58 = vmax.f32 %v1297_v51, 0.0  ;;  %v1505_v63 = vpack.c.bf16 %v1445_v53, %v1443_v57  ;;  %v1301_v0 = vadd.f32 %v1300_v8, %v3406_v24 }
 0x29e   :  { %v1302_v59 = vpop.f32.mrf.mxu0 }
 0x29f   :  { %v1506_v61 = vpack.c.bf16 %v1446_v58, %v1444_v54  ;;  %v1303_v9 = vadd.f32 %v1302_v59, %v3398_v5  ;;  %v1447_v19 = vmax.f32 %v1301_v0, 0.0 }
 0x2a0   :  { %v1304_v23 = vpop.f32.mrf.mxu0 }
 0x2a1   :  { %v1305_v56 = vadd.f32 %v1304_v23, %v3406_v24  ;;  %1778 = vmatprep.mubr.bf16.mxu1 %v1506_v61  ;;  %v1448_v17 = vmax.f32 %v1303_v9, 0.0 }
 0x2a2   :  { %v1306_v21 = vpop.f32.mrf.mxu0  ;;  %1779 = vmatmul.mubr.bf16.gmra.mxu1 %v1505_v63 }
 0x2a3   :  { %v1307_v12 = vadd.f32 %v1306_v21, %v3398_v5  ;;  %v1449_v15 = vmax.f32 %v1305_v56, 0.0 }
 0x2a4   :  { %v1310_v16 = vpop.f32.mrf.mxu0 }
 0x2a5   :  { %v1450_v10 = vmax.f32 %v1307_v12, 0.0  ;;  %v1507_v22 = vpack.c.bf16 %v1449_v15, %v1447_v19  ;;  %v1311_v29 = vadd.f32 %v1310_v16, %v3406_v24 }
 0x2a6   :  { %v1312_v11 = vpop.f32.mrf.mxu0 }
 0x2a7   :  { %v1508_v20 = vpack.c.bf16 %v1450_v10, %v1448_v17  ;;  %v1313_v26 = vadd.f32 %v1312_v11, %v3398_v5  ;;  %v1451_v7 = vmax.f32 %v1311_v29, 0.0 }
 0x2a8   :  { %v1314_v4 = vpop.f32.mrf.mxu0 }
 0x2a9   :  { %v1315_v27 = vadd.f32 %v1314_v4, %v3406_v24  ;;  %1788 = vmatprep.mubr.bf16.mxu1 %v1508_v20  ;;  %v1452_v37 = vmax.f32 %v1313_v26, 0.0 }
 0x2aa   :  { %v1316_v30 = vpop.f32.mrf.mxu0  ;;  %1789 = vmatmul.mubr.bf16.gmra.mxu1 %v1507_v22 }
 0x2ab   :  { %v1317_v32 = vadd.f32 %v1316_v30, %v3398_v5  ;;  %v1453_v46 = vmax.f32 %v1315_v27, 0.0 }
 0x2ac   :  { %v1320_v35 = vpop.f32.mrf.mxu0 }
 0x2ad   :  { %v1454_v60 = vmax.f32 %v1317_v32, 0.0  ;;  %v1509_v42 = vpack.c.bf16 %v1453_v46, %v1451_v7  ;;  %v1321_v47 = vadd.f32 %v1320_v35, %v3406_v24 }
 0x2ae   :  { %v1322_v38 = vpop.f32.mrf.mxu0 }
 0x2af   :  { %v1510_v39 = vpack.c.bf16 %v1454_v60, %v1452_v37  ;;  %v1323_v45 = vadd.f32 %v1322_v38, %v3398_v5  ;;  %v1455_v51 = vmax.f32 %v1321_v47, 0.0 }
 0x2b0   :  { %v1324_v43 = vpop.f32.mrf.mxu0 }
 0x2b1   :  { %v1325_v3 = vadd.f32 %v1324_v43, %v3406_v24  ;;  %1798 = vmatprep.mubr.bf16.mxu1 %v1510_v39  ;;  %v1456_v50 = vmax.f32 %v1323_v45, 0.0 }
 0x2b2   :  { %v1326_v49 = vpop.f32.mrf.mxu0  ;;  %1799 = vmatmul.mubr.bf16.gmra.mxu1 %v1509_v42 }
 0x2b3   :  { %v1327_v40 = vadd.f32 %v1326_v49, %v3398_v5  ;;  %v1457_v33 = vmax.f32 %v1325_v3, 0.0 }
 0x2b4   :  { %v1330_v25 = vpop.f32.mrf.mxu0 }
 0x2b5   :  { %v1458_v36 = vmax.f32 %v1327_v40, 0.0  ;;  %v1511_v8 = vpack.c.bf16 %v1457_v33, %v1455_v51  ;;  %v1331_v59 = vadd.f32 %v1330_v25, %v3406_v24 }
 0x2b6   :  { %v1332_v52 = vpop.f32.mrf.mxu0 }
 0x2b7   :  { %v1512_v53 = vpack.c.bf16 %v1458_v36, %v1456_v50  ;;  %v1333_v58 = vadd.f32 %v1332_v52, %v3398_v5  ;;  %v1459_v56 = vmax.f32 %v1331_v59, 0.0 }
 0x2b8   :  { %v1334_v54 = vpop.f32.mrf.mxu0 }
 0x2b9   :  { %v1335_v57 = vadd.f32 %v1334_v54, %v3406_v24  ;;  %1808 = vmatprep.mubr.bf16.mxu1 %v1512_v53  ;;  %v1460_v23 = vmax.f32 %v1333_v58, 0.0 }
 0x2ba   :  { %v1336_v55 = vpop.f32.mrf.mxu0  ;;  %1809 = vmatmul.mubr.bf16.gmra.mxu1 %v1511_v8 }
 0x2bb   :  { %v1337_v61 = vadd.f32 %v1336_v55, %v3398_v5  ;;  %v1461_v62 = vmax.f32 %v1335_v57, 0.0 }
 0x2bc   :  { %v1340_v63 = vpop.f32.mrf.mxu0 }
 0x2bd   :  { %v1462_v9 = vmax.f32 %v1337_v61, 0.0  ;;  %v1513_v1 = vpack.c.bf16 %v1461_v62, %v1459_v56  ;;  %v1341_v16 = vadd.f32 %v1340_v63, %v3406_v24 }
 0x2be   :  { %v1342_v0 = vpop.f32.mrf.mxu0 }
 0x2bf   :  { %v1514_v21 = vpack.c.bf16 %v1462_v9, %v1460_v23  ;;  %v1343_v18 = vadd.f32 %v1342_v0, %v3398_v5  ;;  %v1463_v14 = vmax.f32 %v1341_v16, 0.0 }
 0x2c0   :  { %v1344_v12 = vpop.f32.mrf.mxu0 }
 0x2c1   :  { %v1345_v15 = vadd.f32 %v1344_v12, %v3406_v24  ;;  %1818 = vmatprep.mubr.bf16.mxu1 %v1514_v21  ;;  %v1464_v48 = vmax.f32 %v1343_v18, 0.0 }
 0x2c2   :  { %v1346_v17 = vpop.f32.mrf.mxu0  ;;  %1819 = vmatmul.mubr.bf16.gmra.mxu1 %v1513_v1 }
 0x2c3   :  { %v1347_v10 = vadd.f32 %v1346_v17, %v3398_v5  ;;  %v1465_v19 = vmax.f32 %v1345_v15, 0.0  ;;  %v2978_v15 = vld [vmem:[#allocation2 + $0x384] ss:$8 sps:$4 sm:$0xff]   ;;  %v2976_v17 = vld [vmem:[#allocation2 + $0x380] ss:$8 sps:$4 sm:$0xff]  }
 0x2c4   :  { %v1350_v11 = vpop.f32.mrf.mxu0  ;;  %2256 = vmatprep.subr.bf16.mxu0 %v2978_v15 }
 0x2c5   :  { %v1466_v20 = vmax.f32 %v1347_v10, 0.0  ;;  %v1515_v26 = vpack.c.bf16 %v1465_v19, %v1463_v14  ;;  %v1351_v31 = vadd.f32 %v1350_v11, %v3406_v24  ;;  %2257 = vmatpush2.bf16.msra.mxu0 %v2976_v17 }
 0x2c6   :  { %v1352_v22 = vpop.f32.mrf.mxu0 }
 0x2c7   :  { %v1516_v4 = vpack.c.bf16 %v1466_v20, %v1464_v48  ;;  %v1353_v29 = vadd.f32 %v1352_v22, %v3398_v5  ;;  %v1467_v7 = vmax.f32 %v1351_v31, 0.0 }
 0x2c8   :  { %v1354_v27 = vpop.f32.mrf.mxu0 }
 0x2c9   :  { %v1355_v30 = vadd.f32 %v1354_v27, %v3406_v24  ;;  %1828 = vmatprep.mubr.bf16.mxu1 %v1516_v4  ;;  %v1468_v37 = vmax.f32 %v1353_v29, 0.0 }
 0x2ca   :  { %v1356_v32 = vpop.f32.mrf.mxu0  ;;  %1829 = vmatmul.mubr.bf16.gmra.mxu1 %v1515_v26 }
 0x2cb   :  { %v1357_v34 = vadd.f32 %v1356_v32, %v3398_v5  ;;  %v1469_v46 = vmax.f32 %v1355_v30, 0.0 }
 0x2cc   :  { %v1360_v35 = vpop.f32.mrf.mxu0 }
 0x2cd   :  { %v1470_v60 = vmax.f32 %v1357_v34, 0.0  ;;  %v1517_v39 = vpack.c.bf16 %v1469_v46, %v1467_v7  ;;  %v1361_v45 = vadd.f32 %v1360_v35, %v3406_v24 }
 0x2ce   :  { %v1362_v38 = vpop.f32.mrf.mxu0 }
 0x2cf   :  { %v1518_v13 = vpack.c.bf16 %v1470_v60, %v1468_v37  ;;  %v1363_v42 = vadd.f32 %v1362_v38, %v3398_v5  ;;  %v1471_v25 = vmax.f32 %v1361_v45, 0.0 }
 0x2d0   :  { %v1364_v41 = vpop.f32.mrf.mxu0 }
 0x2d1   :  { %v1365_v43 = vadd.f32 %v1364_v41, %v3406_v24  ;;  %1838 = vmatprep.mubr.bf16.mxu1 %v1518_v13  ;;  %v1472_v40 = vmax.f32 %v1363_v42, 0.0 }
 0x2d2   :  { %v1366_v3 = vpop.f32.mrf.mxu0  ;;  %1839 = vmatmul.mubr.bf16.gmra.mxu1 %v1517_v39 }
 0x2d3   :  { %v1367_v47 = vadd.f32 %v1366_v3, %v3398_v5  ;;  %v1473_v49 = vmax.f32 %v1365_v43, 0.0 }
 0x2d4   :  { %v1370_v28 = vpop.f32.mrf.mxu0 }
 0x2d5   :  { %v1474_v33 = vmax.f32 %v1367_v47, 0.0  ;;  %v1519_v51 = vpack.c.bf16 %v1473_v49, %v1471_v25  ;;  %v1371_v54 = vadd.f32 %v1370_v28, %v3406_v24 }
 0x2d6   :  { %v1372_v50 = vpop.f32.mrf.mxu0 }
 0x2d7   :  { %v1520_v36 = vpack.c.bf16 %v1474_v33, %v1472_v40  ;;  %v1373_v53 = vadd.f32 %v1372_v50, %v3398_v5  ;;  %v1475_v63 = vmax.f32 %v1371_v54, 0.0 }
 0x2d8   :  { %v1374_v52 = vpop.f32.mrf.mxu0 }
 0x2d9   :  { %v1375_v8 = vadd.f32 %v1374_v52, %v3406_v24  ;;  %1848 = vmatprep.mubr.bf16.mxu1 %v1520_v36  ;;  %v1476_v61 = vmax.f32 %v1373_v53, 0.0 }
 0x2da   :  { %v1376_v58 = vpop.f32.mrf.mxu0  ;;  %1849 = vmatmul.mubr.bf16.gmra.mxu1 %v1519_v51 }
 0x2db   :  { %v1377_v57 = vadd.f32 %v1376_v58, %v3398_v5  ;;  %v1477_v59 = vmax.f32 %v1375_v8, 0.0 }
 0x2dc   :  { %v1380_v55 = vpop.f32.mrf.mxu0 }
 0x2dd   :  { %v1478_v62 = vmax.f32 %v1377_v57, 0.0  ;;  %v1521_v56 = vpack.c.bf16 %v1477_v59, %v1475_v63  ;;  %v1381_v12 = vadd.f32 %v1380_v55, %v3406_v24 }
 0x2de   :  { %v1382_v23 = vpop.f32.mrf.mxu0 }
 0x2df   :  { %v1522_v9 = vpack.c.bf16 %v1478_v62, %v1476_v61  ;;  %v1383_v21 = vadd.f32 %v1382_v23, %v3398_v5  ;;  %v1479_v20 = vmax.f32 %v1381_v12, 0.0 }
 0x2e0   :  { %v1384_v0 = vpop.f32.mrf.mxu0 }
 0x2e1   :  { %v1385_v1 = vadd.f32 %v1384_v0, %v3406_v24  ;;  %1858 = vmatprep.mubr.bf16.mxu1 %v1522_v9  ;;  %v1480_v11 = vmax.f32 %v1383_v21, 0.0 }
 0x2e2   :  { %v1386_v18 = vpop.f32.mrf.mxu0  ;;  %1859 = vmatmul.mubr.bf16.gmra.mxu1 %v1521_v56 }
 0x2e3   :  { %v1387_v16 = vadd.f32 %v1386_v18, %v3398_v5  ;;  %v1481_v10 = vmax.f32 %v1385_v1, 0.0 }
 0x2e4   :  { %v1390_v19 = vpop.f32.mrf.mxu0 }
 0x2e5   :  { %v1482_v48 = vmax.f32 %v1387_v16, 0.0  ;;  %v1523_v4 = vpack.c.bf16 %v1481_v10, %v1479_v20  ;;  %v1391_v30 = vadd.f32 %v1390_v19, %v3406_v24 }
 0x2e6   :  { %v1392_v14 = vpop.f32.mrf.mxu0 }
 0x2e7   :  { %v1524_v22 = vpack.c.bf16 %v1482_v48, %v1480_v11  ;;  %v1393_v27 = vadd.f32 %v1392_v14, %v3398_v5  ;;  %v1483_v60 = vmax.f32 %v1391_v30, 0.0 }
 0x2e8   :  { %v1394_v26 = vpop.f32.mrf.mxu0 }
 0x2e9   :  { %v1395_v29 = vadd.f32 %v1394_v26, %v3406_v24  ;;  %1868 = vmatprep.mubr.bf16.mxu1 %v1524_v22  ;;  %v1484_v35 = vmax.f32 %v1393_v27, 0.0 }
 0x2ea   :  { %v1396_v31 = vpop.f32.mrf.mxu0  ;;  %1869 = vmatmul.mubr.bf16.gmra.mxu1 %v1523_v4 }
 0x2eb   :  { %v1397_v32 = vadd.f32 %v1396_v31, %v3398_v5  ;;  %v1485_v34 = vmax.f32 %v1395_v29, 0.0 }
 0x2ec   :  { %v1400_v46 = vpop.f32.mrf.mxu0 }
 0x2ed   :  { %v1486_v37 = vmax.f32 %v1397_v32, 0.0  ;;  %v1525_v13 = vpack.c.bf16 %v1485_v34, %v1483_v60  ;;  %v1401_v43 = vadd.f32 %v1400_v46, %v3406_v24 }
 0x2ee   :  { %v1402_v7 = vpop.f32.mrf.mxu0 }
 0x2ef   :  { %v1526_v38 = vpack.c.bf16 %v1486_v37, %v1484_v35  ;;  %v1403_v41 = vadd.f32 %v1402_v7, %v3398_v5  ;;  %v1487_v33 = vmax.f32 %v1401_v43, 0.0  ;;  %v1570_v37 = vsub.s32 3, %v3174_v2 }
 0x2f0   :  { %v1404_v39 = vpop.f32.mrf.mxu0 }
 0x2f1   :  { %v1405_v42 = vadd.f32 %v1404_v39, %v3406_v24  ;;  %1878 = vmatprep.mubr.bf16.mxu1 %v1526_v38  ;;  %v1488_v28 = vmax.f32 %v1403_v41, 0.0  ;;  %v3474_v7 = vrot.slane %v3395_v44, %v1570_v37 }
 0x2f2   :  { %v1406_v45 = vpop.f32.mrf.mxu0  ;;  %1879 = vmatmul.mubr.bf16.gmra.mxu1 %v1525_v13 }
 0x2f3   :  { %v1407_v3 = vadd.f32 %v1406_v45, %v3398_v5  ;;  %v1489_v47 = vmax.f32 %v1405_v42, 0.0 }
 0x2f4   :  { %v1410_v49 = vpop.f32.mrf.mxu0 }
 0x2f5   :  { %v1490_v40 = vmax.f32 %v1407_v3, 0.0  ;;  %v1527_v36 = vpack.c.bf16 %v1489_v47, %v1487_v33  ;;  %v1411_v8 = vadd.f32 %v1410_v49, %v3406_v24 }
 0x2f6   :  { %v1412_v25 = vpop.f32.mrf.mxu0 }
 0x2f7   :  { %v1528_v50 = vpack.c.bf16 %v1490_v40, %v1488_v28  ;;  %v1413_v52 = vadd.f32 %v1412_v25, %v3398_v5  ;;  %v1491_v62 = vmax.f32 %v1411_v8, 0.0 }
 0x2f8   :  { %v1414_v51 = vpop.f32.mrf.mxu0 }
 0x2f9   :  { %v1415_v53 = vadd.f32 %v1414_v51, %v3406_v24  ;;  %1888 = vmatprep.mubr.bf16.mxu1 %v1528_v50  ;;  %v1492_v55 = vmax.f32 %v1413_v52, 0.0 }
 0x2fa   :  { %v1416_v54 = vpop.f32.mrf.mxu0  ;;  %1889 = vmatmul.mubr.bf16.gmra.mxu1 %v1527_v36 }
 0x2fb   :  { %v1417_v58 = vadd.f32 %v1416_v54, %v3398_v5  ;;  %v1493_v57 = vmax.f32 %v1415_v53, 0.0 }
 0x2fc   :  { %v1420_v59 = vpop.f32.mrf.mxu0 }
 0x2fd   :  { %v1494_v61 = vmax.f32 %v1417_v58, 0.0  ;;  %v1529_v9 = vpack.c.bf16 %v1493_v57, %v1491_v62  ;;  %v1421_v1 = vadd.f32 %v1420_v59, %v3406_v24 }
 0x2fe   :  { %v1422_v63 = vpop.f32.mrf.mxu0 }
 0x2ff   :  { %v1530_v23 = vpack.c.bf16 %v1494_v61, %v1492_v55  ;;  %v1423_v0 = vadd.f32 %v1422_v63, %v3398_v5  ;;  %v1495_v19 = vmax.f32 %v1421_v1, 0.0 }
 0x300   :  { %v1424_v56 = vpop.f32.mrf.mxu0 }
 0x301   :  { %v1425_v21 = vadd.f32 %v1424_v56, %v3406_v24  ;;  %1898 = vmatprep.mubr.bf16.mxu1 %v1530_v23  ;;  %v1496_v17 = vmax.f32 %v1423_v0, 0.0 }
 0x302   :  { %v1426_v12 = vpop.f32.mrf.mxu0  ;;  %1899 = vmatmul.mubr.bf16.gmra.mxu1 %v1529_v9 }
 0x303   :  { %v1427_v18 = vadd.f32 %v1426_v12, %v3398_v5  ;;  %v1497_v15 = vmax.f32 %v1425_v21, 0.0 }
 0x304   :  { %v1430_v16 = vpop.f32.mrf.mxu0 }
 0x305   :  { %v1498_v10 = vmax.f32 %v1427_v18, 0.0  ;;  %v1531_v20 = vpack.c.bf16 %v1497_v15, %v1495_v19  ;;  %v1431_v26 = vadd.f32 %v1430_v16, %v3406_v24 }
 0x306   :  { %v1432_v11 = vpop.f32.mrf.mxu0 }
 0x307   :  { %v1532_v48 = vpack.c.bf16 %v1498_v10, %v1496_v17  ;;  %v1433_v22 = vadd.f32 %v1432_v11, %v3398_v5  ;;  %v1499_v34 = vmax.f32 %v1431_v26, 0.0 }
 0x308   :  { %v1434_v14 = vpop.f32.mrf.mxu0 }
 0x309   :  { %v1435_v4 = vadd.f32 %v1434_v14, %v3406_v24  ;;  %1908 = vmatprep.mubr.bf16.mxu1 %v1532_v48  ;;  %v1500_v31 = vmax.f32 %v1433_v22, 0.0  ;;  %v3477_v24 = vrot.slane %v3403_v6, %v1570_v37 }
 0x30a   :  { %v1436_v27 = vpop.f32.mrf.mxu0  ;;  %1909 = vmatmul.mubr.bf16.gmra.mxu1 %v1531_v20 }
 0x30b   :  { %v1437_v29 = vadd.f32 %v1436_v27, %v3398_v5  ;;  %v1501_v30 = vmax.f32 %v1435_v4, 0.0 }
 0x30d   :  { %v1502_v32 = vmax.f32 %v1437_v29, 0.0  ;;  %v1533_v35 = vpack.c.bf16 %v1501_v30, %v1499_v34 }
 0x30f   :  { %v1534_v46 = vpack.c.bf16 %v1502_v32, %v1500_v31 }
 0x311   :  { %1918 = vmatprep.mubr.bf16.mxu1 %v1534_v46 }
 0x312   :  { %1919 = vmatmul.mubr.bf16.gmra.mxu1 %v1533_v35 }
 0x35a   :  { %v1770_v60 = vpop.f32.mrf.mxu1 }
 0x35b   :  { %v1771_v41 = vadd.f32 %v1770_v60, %v3477_v24 }
 0x35c   :  { %v1772_v38 = vpop.f32.mrf.mxu1 }
 0x35d   :  { %v1773_v5 = vadd.f32 %v1772_v38, %v3474_v7  ;;  %v1929_v44 = vmax.f32 %v1771_v41, 0.0 }
 0x35e   :  { %v1774_v13 = vpop.f32.mrf.mxu1 }
 0x35f   :  { %v1775_v39 = vadd.f32 %v1774_v13, %v3477_v24  ;;  %v1930_v47 = vmax.f32 %v1773_v5, 0.0 }
 0x360   :  { %v1776_v42 = vpop.f32.mrf.mxu1 }
 0x361   :  { %v1777_v43 = vadd.f32 %v1776_v42, %v3474_v7  ;;  %v1931_v45 = vmax.f32 %v1775_v39, 0.0 }
 0x362   :  { %v1780_v3 = vpop.f32.mrf.mxu1 }
 0x363   :  { %v1932_v49 = vmax.f32 %v1777_v43, 0.0  ;;  %v1993_v6 = vpack.c.bf16 %v1931_v45, %v1929_v44  ;;  %v1781_v36 = vadd.f32 %v1780_v3, %v3477_v24 }
 0x364   :  { %v1782_v28 = vpop.f32.mrf.mxu1 }
 0x365   :  { %v1994_v40 = vpack.c.bf16 %v1932_v49, %v1930_v47  ;;  %v1783_v25 = vadd.f32 %v1782_v28, %v3474_v7  ;;  %v1933_v57 = vmax.f32 %v1781_v36, 0.0 }
 0x366   :  { %v1784_v33 = vpop.f32.mrf.mxu1 }
 0x367   :  { %v1785_v50 = vadd.f32 %v1784_v33, %v3477_v24  ;;  %2258 = vmatprep.mubr.bf16.mxu0 %v1994_v40  ;;  %v1934_v54 = vmax.f32 %v1783_v25, 0.0 }
 0x368   :  { %v1786_v51 = vpop.f32.mrf.mxu1  ;;  %2259 = vmatmul.mubr.bf16.vlgmr.msra.gmra.mxu0 %v1993_v6 }
 0x369   :  { %v1787_v52 = vadd.f32 %v1786_v51, %v3474_v7  ;;  %v1935_v53 = vmax.f32 %v1785_v50, 0.0 }
 0x36a   :  { %v1790_v8 = vpop.f32.mrf.mxu1 }
 0x36b   :  { %v1936_v58 = vmax.f32 %v1787_v52, 0.0  ;;  %v1995_v61 = vpack.c.bf16 %v1935_v53, %v1933_v57  ;;  %v1791_v9 = vadd.f32 %v1790_v8, %v3477_v24 }
 0x36c   :  { %v1792_v59 = vpop.f32.mrf.mxu1 }
 0x36d   :  { %v1996_v55 = vpack.c.bf16 %v1936_v58, %v1934_v54  ;;  %v1793_v63 = vadd.f32 %v1792_v59, %v3474_v7  ;;  %v1937_v15 = vmax.f32 %v1791_v9, 0.0 }
 0x36e   :  { %v1794_v62 = vpop.f32.mrf.mxu1 }
 0x36f   :  { %v1795_v23 = vadd.f32 %v1794_v62, %v3477_v24  ;;  %2268 = vmatprep.mubr.bf16.mxu0 %v1996_v55  ;;  %v1938_v12 = vmax.f32 %v1793_v63, 0.0 }
 0x370   :  { %v1796_v56 = vpop.f32.mrf.mxu1  ;;  %2269 = vmatmul.mubr.bf16.gmra.mxu0 %v1995_v61 }
 0x371   :  { %v1797_v0 = vadd.f32 %v1796_v56, %v3474_v7  ;;  %v1939_v21 = vmax.f32 %v1795_v23, 0.0 }
 0x372   :  { %v1800_v1 = vpop.f32.mrf.mxu1 }
 0x373   :  { %v1940_v18 = vmax.f32 %v1797_v0, 0.0  ;;  %v1997_v10 = vpack.c.bf16 %v1939_v21, %v1937_v15  ;;  %v1801_v20 = vadd.f32 %v1800_v1, %v3477_v24 }
 0x374   :  { %v1802_v16 = vpop.f32.mrf.mxu1 }
 0x375   :  { %v1998_v17 = vpack.c.bf16 %v1940_v18, %v1938_v12  ;;  %v1803_v11 = vadd.f32 %v1802_v16, %v3474_v7  ;;  %v1941_v30 = vmax.f32 %v1801_v20, 0.0 }
 0x376   :  { %v1804_v19 = vpop.f32.mrf.mxu1 }
 0x377   :  { %v1805_v48 = vadd.f32 %v1804_v19, %v3477_v24  ;;  %2278 = vmatprep.mubr.bf16.mxu0 %v1998_v17  ;;  %v1942_v27 = vmax.f32 %v1803_v11, 0.0 }
 0x378   :  { %v1806_v14 = vpop.f32.mrf.mxu1  ;;  %2279 = vmatmul.mubr.bf16.gmra.mxu0 %v1997_v10 }
 0x379   :  { %v1807_v22 = vadd.f32 %v1806_v14, %v3474_v7  ;;  %v1943_v4 = vmax.f32 %v1805_v48, 0.0 }
 0x37a   :  { %v1810_v26 = vpop.f32.mrf.mxu1 }
 0x37b   :  { %v1944_v29 = vmax.f32 %v1807_v22, 0.0  ;;  %v1999_v34 = vpack.c.bf16 %v1943_v4, %v1941_v30  ;;  %v1811_v60 = vadd.f32 %v1810_v26, %v3477_v24 }
 0x37c   :  { %v1812_v31 = vpop.f32.mrf.mxu1 }
 0x37d   :  { %v2000_v32 = vpack.c.bf16 %v1944_v29, %v1942_v27  ;;  %v1813_v35 = vadd.f32 %v1812_v31, %v3474_v7  ;;  %v1945_v43 = vmax.f32 %v1811_v60, 0.0 }
 0x37e   :  { %v1814_v46 = vpop.f32.mrf.mxu1 }
 0x37f   :  { %v1815_v37 = vadd.f32 %v1814_v46, %v3477_v24  ;;  %2288 = vmatprep.mubr.bf16.mxu0 %v2000_v32  ;;  %v1946_v41 = vmax.f32 %v1813_v35, 0.0 }
 0x380   :  { %v1816_v38 = vpop.f32.mrf.mxu1  ;;  %2289 = vmatmul.mubr.bf16.gmra.mxu0 %v1999_v34 }
 0x381   :  { %v1817_v13 = vadd.f32 %v1816_v38, %v3474_v7  ;;  %v1947_v5 = vmax.f32 %v1815_v37, 0.0 }
 0x382   :  { %v1820_v39 = vpop.f32.mrf.mxu1 }
 0x383   :  { %v1948_v42 = vmax.f32 %v1817_v13, 0.0  ;;  %v2001_v47 = vpack.c.bf16 %v1947_v5, %v1945_v43  ;;  %v1821_v40 = vadd.f32 %v1820_v39, %v3477_v24 }
 0x384   :  { %v1822_v45 = vpop.f32.mrf.mxu1 }
 0x385   :  { %v2002_v3 = vpack.c.bf16 %v1948_v42, %v1946_v41  ;;  %v1823_v44 = vadd.f32 %v1822_v45, %v3474_v7  ;;  %v1949_v52 = vmax.f32 %v1821_v40, 0.0 }
 0x386   :  { %v1824_v49 = vpop.f32.mrf.mxu1 }
 0x387   :  { %v1825_v28 = vadd.f32 %v1824_v49, %v3477_v24  ;;  %2298 = vmatprep.mubr.bf16.mxu0 %v2002_v3  ;;  %v1950_v36 = vmax.f32 %v1823_v44, 0.0 }
 0x388   :  { %v1826_v6 = vpop.f32.mrf.mxu1  ;;  %2299 = vmatmul.mubr.bf16.gmra.mxu0 %v2001_v47 }
 0x389   :  { %v1827_v33 = vadd.f32 %v1826_v6, %v3474_v7  ;;  %v1951_v25 = vmax.f32 %v1825_v28, 0.0 }
 0x38a   :  { %v1830_v50 = vpop.f32.mrf.mxu1 }
 0x38b   :  { %v1952_v51 = vmax.f32 %v1827_v33, 0.0  ;;  %v2003_v54 = vpack.c.bf16 %v1951_v25, %v1949_v52  ;;  %v1831_v55 = vadd.f32 %v1830_v50, %v3477_v24 }
 0x38c   :  { %v1832_v53 = vpop.f32.mrf.mxu1 }
 0x38d   :  { %v2004_v8 = vpack.c.bf16 %v1952_v51, %v1950_v36  ;;  %v1833_v57 = vadd.f32 %v1832_v53, %v3474_v7  ;;  %v1953_v0 = vmax.f32 %v1831_v55, 0.0 }
 0x38e   :  { %v1834_v58 = vpop.f32.mrf.mxu1 }
 0x38f   :  { %v1835_v59 = vadd.f32 %v1834_v58, %v3477_v24  ;;  %2308 = vmatprep.mubr.bf16.mxu0 %v2004_v8  ;;  %v1954_v9 = vmax.f32 %v1833_v57, 0.0 }
 0x390   :  { %v1836_v61 = vpop.f32.mrf.mxu1  ;;  %2309 = vmatmul.mubr.bf16.gmra.mxu0 %v2003_v54 }
 0x391   :  { %v1837_v62 = vadd.f32 %v1836_v61, %v3474_v7  ;;  %v1955_v63 = vmax.f32 %v1835_v59, 0.0 }
 0x392   :  { %v1840_v23 = vpop.f32.mrf.mxu1 }
 0x393   :  { %v1956_v56 = vmax.f32 %v1837_v62, 0.0  ;;  %v2005_v12 = vpack.c.bf16 %v1955_v63, %v1953_v0  ;;  %v1841_v17 = vadd.f32 %v1840_v23, %v3477_v24 }
 0x394   :  { %v1842_v21 = vpop.f32.mrf.mxu1 }
 0x395   :  { %v2006_v1 = vpack.c.bf16 %v1956_v56, %v1954_v9  ;;  %v1843_v15 = vadd.f32 %v1842_v21, %v3474_v7  ;;  %v1957_v22 = vmax.f32 %v1841_v17, 0.0 }
 0x396   :  { %v1844_v18 = vpop.f32.mrf.mxu1 }
 0x397   :  { %v1845_v16 = vadd.f32 %v1844_v18, %v3477_v24  ;;  %2318 = vmatprep.mubr.bf16.mxu0 %v2006_v1  ;;  %v1958_v20 = vmax.f32 %v1843_v15, 0.0 }
 0x398   :  { %v1846_v10 = vpop.f32.mrf.mxu1  ;;  %2319 = vmatmul.mubr.bf16.gmra.mxu0 %v2005_v12 }
 0x399   :  { %v1847_v19 = vadd.f32 %v1846_v10, %v3474_v7  ;;  %v1959_v11 = vmax.f32 %v1845_v16, 0.0 }
 0x39a   :  { %v1850_v48 = vpop.f32.mrf.mxu1 }
 0x39b   :  { %v1960_v14 = vmax.f32 %v1847_v19, 0.0  ;;  %v2007_v27 = vpack.c.bf16 %v1959_v11, %v1957_v22  ;;  %v1851_v32 = vadd.f32 %v1850_v48, %v3477_v24 }
 0x39c   :  { %v1852_v4 = vpop.f32.mrf.mxu1 }
 0x39d   :  { %v2008_v26 = vpack.c.bf16 %v1960_v14, %v1958_v20  ;;  %v1853_v30 = vadd.f32 %v1852_v4, %v3474_v7  ;;  %v1961_v13 = vmax.f32 %v1851_v32, 0.0 }
 0x39e   :  { %v1854_v29 = vpop.f32.mrf.mxu1 }
 0x39f   :  { %v1855_v31 = vadd.f32 %v1854_v29, %v3477_v24  ;;  %2328 = vmatprep.mubr.bf16.mxu0 %v2008_v26  ;;  %v1962_v60 = vmax.f32 %v1853_v30, 0.0 }
 0x3a0   :  { %v1856_v34 = vpop.f32.mrf.mxu1  ;;  %2329 = vmatmul.mubr.bf16.gmra.mxu0 %v2007_v27 }
 0x3a1   :  { %v1857_v46 = vadd.f32 %v1856_v34, %v3474_v7  ;;  %v1963_v35 = vmax.f32 %v1855_v31, 0.0 }
 0x3a2   :  { %v1860_v37 = vpop.f32.mrf.mxu1 }
 0x3a3   :  { %v1964_v38 = vmax.f32 %v1857_v46, 0.0  ;;  %v2009_v41 = vpack.c.bf16 %v1963_v35, %v1961_v13  ;;  %v1861_v3 = vadd.f32 %v1860_v37, %v3477_v24 }
 0x3a4   :  { %v1862_v5 = vpop.f32.mrf.mxu1 }
 0x3a5   :  { %v2010_v39 = vpack.c.bf16 %v1964_v38, %v1962_v60  ;;  %v1863_v43 = vadd.f32 %v1862_v5, %v3474_v7  ;;  %v1965_v33 = vmax.f32 %v1861_v3, 0.0 }
 0x3a6   :  { %v1864_v42 = vpop.f32.mrf.mxu1 }
 0x3a7   :  { %v1865_v45 = vadd.f32 %v1864_v42, %v3477_v24  ;;  %2338 = vmatprep.mubr.bf16.mxu0 %v2010_v39  ;;  %v1966_v40 = vmax.f32 %v1863_v43, 0.0 }
 0x3a8   :  { %v1866_v47 = vpop.f32.mrf.mxu1  ;;  %2339 = vmatmul.mubr.bf16.gmra.mxu0 %v2009_v41 }
 0x3a9   :  { %v1867_v49 = vadd.f32 %v1866_v47, %v3474_v7  ;;  %v1967_v44 = vmax.f32 %v1865_v45, 0.0 }
 0x3aa   :  { %v1870_v28 = vpop.f32.mrf.mxu1 }
 0x3ab   :  { %v1968_v6 = vmax.f32 %v1867_v49, 0.0  ;;  %v2011_v36 = vpack.c.bf16 %v1967_v44, %v1965_v33  ;;  %v1871_v8 = vadd.f32 %v1870_v28, %v3477_v24 }
 0x3ac   :  { %v1872_v25 = vpop.f32.mrf.mxu1 }
 0x3ad   :  { %v2012_v50 = vpack.c.bf16 %v1968_v6, %v1966_v40  ;;  %v1873_v52 = vadd.f32 %v1872_v25, %v3474_v7  ;;  %v1969_v62 = vmax.f32 %v1871_v8, 0.0 }
 0x3ae   :  { %v1874_v51 = vpop.f32.mrf.mxu1 }
 0x3af   :  { %v1875_v53 = vadd.f32 %v1874_v51, %v3477_v24  ;;  %2348 = vmatprep.mubr.bf16.mxu0 %v2012_v50  ;;  %v1970_v55 = vmax.f32 %v1873_v52, 0.0 }
 0x3b0   :  { %v1876_v54 = vpop.f32.mrf.mxu1  ;;  %2349 = vmatmul.mubr.bf16.gmra.mxu0 %v2011_v36 }
 0x3b1   :  { %v1877_v58 = vadd.f32 %v1876_v54, %v3474_v7  ;;  %v1971_v57 = vmax.f32 %v1875_v53, 0.0 }
 0x3b2   :  { %v1880_v59 = vpop.f32.mrf.mxu1 }
 0x3b3   :  { %v1972_v61 = vmax.f32 %v1877_v58, 0.0  ;;  %v2013_v9 = vpack.c.bf16 %v1971_v57, %v1969_v62  ;;  %v1881_v1 = vadd.f32 %v1880_v59, %v3477_v24 }
 0x3b4   :  { %v1882_v63 = vpop.f32.mrf.mxu1 }
 0x3b5   :  { %v2014_v23 = vpack.c.bf16 %v1972_v61, %v1970_v55  ;;  %v1883_v0 = vadd.f32 %v1882_v63, %v3474_v7  ;;  %v1973_v19 = vmax.f32 %v1881_v1, 0.0 }
 0x3b6   :  { %v1884_v56 = vpop.f32.mrf.mxu1 }
 0x3b7   :  { %v1885_v21 = vadd.f32 %v1884_v56, %v3477_v24  ;;  %2358 = vmatprep.mubr.bf16.mxu0 %v2014_v23  ;;  %v1974_v17 = vmax.f32 %v1883_v0, 0.0 }
 0x3b8   :  { %v1886_v12 = vpop.f32.mrf.mxu1  ;;  %2359 = vmatmul.mubr.bf16.gmra.mxu0 %v2013_v9 }
 0x3b9   :  { %v1887_v18 = vadd.f32 %v1886_v12, %v3474_v7  ;;  %v1975_v15 = vmax.f32 %v1885_v21, 0.0 }
 0x3ba   :  { %v1890_v16 = vpop.f32.mrf.mxu1 }
 0x3bb   :  { %v1976_v10 = vmax.f32 %v1887_v18, 0.0  ;;  %v2015_v20 = vpack.c.bf16 %v1975_v15, %v1973_v19  ;;  %v1891_v26 = vadd.f32 %v1890_v16, %v3477_v24  ;;  %v2060_v16 = vsub.s32 4, %v3174_v2 }
 0x3bc   :  { %v1892_v11 = vpop.f32.mrf.mxu1 }
 0x3bd   :  { %v2016_v48 = vpack.c.bf16 %v1976_v10, %v1974_v17  ;;  %v1893_v22 = vadd.f32 %v1892_v11, %v3474_v7  ;;  %v1977_v46 = vmax.f32 %v1891_v26, 0.0  ;;  %v2981_v17 = vld [vmem:[%s3624_s3] sm:$0x1f] }
 0x3be   :  { %v1894_v14 = vpop.f32.mrf.mxu1  ;;  %v3547_v10 = vrot.slane %v2981_v17, %v2060_v16 }
 0x3bf   :  { %v1895_v4 = vadd.f32 %v1894_v14, %v3477_v24  ;;  %2368 = vmatprep.mubr.bf16.mxu0 %v2016_v48  ;;  %v1978_v32 = vmax.f32 %v1893_v22, 0.0 }
 0x3c0   :  { %v1896_v27 = vpop.f32.mrf.mxu1  ;;  %2369 = vmatmul.mubr.bf16.gmra.mxu0 %v2015_v20 }
 0x3c1   :  { %v1897_v29 = vadd.f32 %v1896_v27, %v3474_v7  ;;  %v1979_v30 = vmax.f32 %v1895_v4, 0.0 }
 0x3c2   :  { %v1900_v31 = vpop.f32.mrf.mxu1 }
 0x3c3   :  { %v1980_v34 = vmax.f32 %v1897_v29, 0.0  ;;  %v2017_v60 = vpack.c.bf16 %v1979_v30, %v1977_v46  ;;  %v1901_v39 = vadd.f32 %v1900_v31, %v3477_v24 }
 0x3c4   :  { %v1902_v35 = vpop.f32.mrf.mxu1 }
 0x3c5   :  { %v2018_v37 = vpack.c.bf16 %v1980_v34, %v1978_v32  ;;  %v1903_v13 = vadd.f32 %v1902_v35, %v3474_v7  ;;  %v1981_v49 = vmax.f32 %v1901_v39, 0.0 }
 0x3c6   :  { %v1904_v38 = vpop.f32.mrf.mxu1 }
 0x3c7   :  { %v1905_v5 = vadd.f32 %v1904_v38, %v3477_v24  ;;  %2378 = vmatprep.mubr.bf16.mxu0 %v2018_v37  ;;  %v1982_v3 = vmax.f32 %v1903_v13, 0.0 }
 0x3c8   :  { %v1906_v41 = vpop.f32.mrf.mxu1  ;;  %2379 = vmatmul.mubr.bf16.gmra.mxu0 %v2017_v60 }
 0x3c9   :  { %v1907_v42 = vadd.f32 %v1906_v41, %v3474_v7  ;;  %v1983_v43 = vmax.f32 %v1905_v5, 0.0 }
 0x3ca   :  { %v1910_v45 = vpop.f32.mrf.mxu1 }
 0x3cb   :  { %v1984_v47 = vmax.f32 %v1907_v42, 0.0  ;;  %v2019_v40 = vpack.c.bf16 %v1983_v43, %v1981_v49  ;;  %v1911_v50 = vadd.f32 %v1910_v45, %v3477_v24 }
 0x3cc   :  { %v1912_v44 = vpop.f32.mrf.mxu1 }
 0x3cd   :  { %v2020_v28 = vpack.c.bf16 %v1984_v47, %v1982_v3  ;;  %v1913_v33 = vadd.f32 %v1912_v44, %v3474_v7  ;;  %v1985_v58 = vmax.f32 %v1911_v50, 0.0 }
 0x3ce   :  { %v1914_v6 = vpop.f32.mrf.mxu1 }
 0x3cf   :  { %v1915_v25 = vadd.f32 %v1914_v6, %v3477_v24  ;;  %2388 = vmatprep.mubr.bf16.mxu0 %v2020_v28  ;;  %v1986_v8 = vmax.f32 %v1913_v33, 0.0 }
 0x3d0   :  { %v1916_v36 = vpop.f32.mrf.mxu1  ;;  %2389 = vmatmul.mubr.bf16.gmra.mxu0 %v2019_v40 }
 0x3d1   :  { %v1917_v51 = vadd.f32 %v1916_v36, %v3474_v7  ;;  %v1987_v52 = vmax.f32 %v1915_v25, 0.0 }
 0x3d2   :  { %v1920_v53 = vpop.f32.mrf.mxu1 }
 0x3d3   :  { %v1988_v54 = vmax.f32 %v1917_v51, 0.0  ;;  %v2021_v55 = vpack.c.bf16 %v1987_v52, %v1985_v58  ;;  %v1921_v23 = vadd.f32 %v1920_v53, %v3477_v24 }
 0x3d4   :  { %v1922_v57 = vpop.f32.mrf.mxu1 }
 0x3d5   :  { %v2022_v59 = vpack.c.bf16 %v1988_v54, %v1986_v8  ;;  %v1923_v62 = vadd.f32 %v1922_v57, %v3474_v7  ;;  %v1989_v12 = vmax.f32 %v1921_v23, 0.0 }
 0x3d6   :  { %v1924_v61 = vpop.f32.mrf.mxu1 }
 0x3d7   :  { %v1925_v63 = vadd.f32 %v1924_v61, %v3477_v24  ;;  %2398 = vmatprep.mubr.bf16.mxu0 %v2022_v59  ;;  %v1990_v21 = vmax.f32 %v1923_v62, 0.0 }
 0x3d8   :  { %v1926_v9 = vpop.f32.mrf.mxu1  ;;  %2399 = vmatmul.mubr.bf16.gmra.mxu0 %v2021_v55 }
 0x3d9   :  { %v1927_v56 = vadd.f32 %v1926_v9, %v3474_v7  ;;  %v1991_v0 = vmax.f32 %v1925_v63, 0.0  ;;  %v2982_v7 = vld [vmem:[%s3624_s3 + $0x8] sm:$0x1f]  ;;  %s3031_s3 = smov [#allocation5]  }
 0x3da   :  { %v3552_v24 = vrot.slane %v2982_v7, %v2060_v16  ;;  %s2552_s14 = sshll.u32 %s3031_s3, 4  ;;  %s2553_s14 = int_to_ptr.vmem [resolvable:$true] %s2552_s14 }
 0x3db   :  { %v1992_v1 = vmax.f32 %v1927_v56, 0.0  ;;  %v2023_v15 = vpack.c.bf16 %v1991_v0, %v1989_v12  ;;  %s3003_s15 = scalar_lea.vmem %s2553_s14, 8192  ;;  %p3008_p6 = scmp.lt.s32.totalorder %s2553_s14, %s2553_s14 }
 0x3dc   :  { %p3004_p5 = scmp.ne.s32.totalorder %s2553_s14, %s3003_s15  ;;  %p3009_p7 = scmp.lt.s32.totalorder %s3003_s15, %s3003_s15 }
 0x3dd   :  { %v2024_v18 = vpack.c.bf16 %v1992_v1, %v1990_v21 }
 0x3de   :  { %p3010_p8 = por %p3009_p7, %p3008_p6 }
 0x3df   :  { %2408 = vmatprep.mubr.bf16.mxu0 %v2024_v18 }
 0x3e0   :  { %2409 = vmatmul.mubr.bf16.gmra.mxu0 %v2023_v15  ;;  %p3011_p9 = pnand %p3010_p8, %p3004_p5 }
 0x428   :  { %v2260_v19 = vpop.f32.mrf.mxu0 }
 0x429   :  { %v2261_v11 = vadd.f32 %v2260_v19, %v3547_v10 }
 0x42a   :  { %v2262_v48 = vpop.f32.mrf.mxu0 }
 0x42b   :  { %v2419_v20 = vmax.f32 %v2261_v11, 0.0  ;;  %v2263_v14 = vadd.f32 %v2262_v48, %v3552_v24 }
 0x42c   :  { %v2264_v2 = vpop.f32.mrf.mxu0 }
 0x42d   :  { %2483 = vst [vmem:[#allocation5] sm:$0xff] %v2419_v20  ;;  %v2420_v22 = vmax.f32 %v2263_v14, 0.0  ;;  %v2265_v4 = vadd.f32 %v2264_v2, %v3547_v10 }
 0x42e   :  { %v2266_v26 = vpop.f32.mrf.mxu0 }
 0x42f   :  { %2484 = vst [vmem:[#allocation5 + $0x8] sm:$0xff] %v2420_v22  ;;  %v2421_v27 = vmax.f32 %v2265_v4, 0.0  ;;  %v2267_v29 = vadd.f32 %v2266_v26, %v3552_v24 }
 0x430   :  { %v2270_v30 = vpop.f32.mrf.mxu0 }
 0x431   :  { %2485 = vst [vmem:[#allocation5 + $0x10] sm:$0xff] %v2421_v27  ;;  %v2422_v31 = vmax.f32 %v2267_v29, 0.0  ;;  %v2271_v32 = vadd.f32 %v2270_v30, %v3547_v10 }
 0x432   :  { %v2272_v34 = vpop.f32.mrf.mxu0 }
 0x433   :  { %2486 = vst [vmem:[#allocation5 + $0x18] sm:$0xff] %v2422_v31  ;;  %v2423_v46 = vmax.f32 %v2271_v32, 0.0  ;;  %v2273_v35 = vadd.f32 %v2272_v34, %v3552_v24 }
 0x434   :  { %v2274_v37 = vpop.f32.mrf.mxu0 }
 0x435   :  { %2487 = vst [vmem:[#allocation5 + $0x20] sm:$0xff] %v2423_v46  ;;  %v2424_v60 = vmax.f32 %v2273_v35, 0.0  ;;  %v2275_v38 = vadd.f32 %v2274_v37, %v3547_v10 }
 0x436   :  { %v2276_v13 = vpop.f32.mrf.mxu0 }
 0x437   :  { %2488 = vst [vmem:[#allocation5 + $0x28] sm:$0xff] %v2424_v60  ;;  %v2425_v5 = vmax.f32 %v2275_v38, 0.0  ;;  %v2277_v39 = vadd.f32 %v2276_v13, %v3552_v24 }
 0x438   :  { %v2280_v41 = vpop.f32.mrf.mxu0 }
 0x439   :  { %2489 = vst [vmem:[#allocation5 + $0x30] sm:$0xff] %v2425_v5  ;;  %v2426_v42 = vmax.f32 %v2277_v39, 0.0  ;;  %v2281_v43 = vadd.f32 %v2280_v41, %v3547_v10 }
 0x43a   :  { %v2282_v45 = vpop.f32.mrf.mxu0 }
 0x43b   :  { %2490 = vst [vmem:[#allocation5 + $0x38] sm:$0xff] %v2426_v42  ;;  %v2427_v3 = vmax.f32 %v2281_v43, 0.0  ;;  %v2283_v47 = vadd.f32 %v2282_v45, %v3552_v24 }
 0x43c   :  { %v2284_v49 = vpop.f32.mrf.mxu0 }
 0x43d   :  { %2491 = vst [vmem:[#allocation5 + $0x40] sm:$0xff] %v2427_v3  ;;  %v2428_v44 = vmax.f32 %v2283_v47, 0.0  ;;  %v2285_v28 = vadd.f32 %v2284_v49, %v3547_v10 }
 0x43e   :  { %v2286_v40 = vpop.f32.mrf.mxu0 }
 0x43f   :  { %2492 = vst [vmem:[#allocation5 + $0x48] sm:$0xff] %v2428_v44  ;;  %v2429_v6 = vmax.f32 %v2285_v28, 0.0  ;;  %v2287_v33 = vadd.f32 %v2286_v40, %v3552_v24 }
 0x440   :  { %v2290_v25 = vpop.f32.mrf.mxu0 }
 0x441   :  { %2493 = vst [vmem:[#allocation5 + $0x50] sm:$0xff] %v2429_v6  ;;  %v2430_v50 = vmax.f32 %v2287_v33, 0.0  ;;  %v2291_v36 = vadd.f32 %v2290_v25, %v3547_v10 }
 0x442   :  { %v2292_v51 = vpop.f32.mrf.mxu0 }
 0x443   :  { %2494 = vst [vmem:[#allocation5 + $0x58] sm:$0xff] %v2430_v50  ;;  %v2431_v52 = vmax.f32 %v2291_v36, 0.0  ;;  %v2293_v53 = vadd.f32 %v2292_v51, %v3552_v24 }
 0x444   :  { %v2294_v8 = vpop.f32.mrf.mxu0 }
 0x445   :  { %2495 = vst [vmem:[#allocation5 + $0x60] sm:$0xff] %v2431_v52  ;;  %v2432_v54 = vmax.f32 %v2293_v53, 0.0  ;;  %v2295_v58 = vadd.f32 %v2294_v8, %v3547_v10 }
 0x446   :  { %v2296_v57 = vpop.f32.mrf.mxu0 }
 0x447   :  { %2496 = vst [vmem:[#allocation5 + $0x68] sm:$0xff] %v2432_v54  ;;  %v2433_v59 = vmax.f32 %v2295_v58, 0.0  ;;  %v2297_v55 = vadd.f32 %v2296_v57, %v3552_v24 }
 0x448   :  { %v2300_v61 = vpop.f32.mrf.mxu0 }
 0x449   :  { %2497 = vst [vmem:[#allocation5 + $0x70] sm:$0xff] %v2433_v59  ;;  %v2434_v62 = vmax.f32 %v2297_v55, 0.0  ;;  %v2301_v63 = vadd.f32 %v2300_v61, %v3547_v10 }
 0x44a   :  { %v2302_v23 = vpop.f32.mrf.mxu0 }
 0x44b   :  { %2498 = vst [vmem:[#allocation5 + $0x78] sm:$0xff] %v2434_v62  ;;  %v2435_v9 = vmax.f32 %v2301_v63, 0.0  ;;  %v2303_v56 = vadd.f32 %v2302_v23, %v3552_v24 }
 0x44c   :  { %v2304_v0 = vpop.f32.mrf.mxu0 }
 0x44d   :  { %2499 = vst [vmem:[#allocation5 + $0x80] sm:$0xff] %v2435_v9  ;;  %v2436_v21 = vmax.f32 %v2303_v56, 0.0  ;;  %v2305_v1 = vadd.f32 %v2304_v0, %v3547_v10 }
 0x44e   :  { %v2306_v12 = vpop.f32.mrf.mxu0 }
 0x44f   :  { %2500 = vst [vmem:[#allocation5 + $0x88] sm:$0xff] %v2436_v21  ;;  %v2437_v18 = vmax.f32 %v2305_v1, 0.0  ;;  %v2307_v15 = vadd.f32 %v2306_v12, %v3552_v24 }
 0x450   :  { %v2310_v16 = vpop.f32.mrf.mxu0 }
 0x451   :  { %2501 = vst [vmem:[#allocation5 + $0x90] sm:$0xff] %v2437_v18  ;;  %v2438_v17 = vmax.f32 %v2307_v15, 0.0  ;;  %v2311_v7 = vadd.f32 %v2310_v16, %v3547_v10 }
 0x452   :  { %v2312_v19 = vpop.f32.mrf.mxu0 }
 0x453   :  { %2502 = vst [vmem:[#allocation5 + $0x98] sm:$0xff] %v2438_v17  ;;  %v2439_v11 = vmax.f32 %v2311_v7, 0.0  ;;  %v2313_v48 = vadd.f32 %v2312_v19, %v3552_v24 }
 0x454   :  { %v2314_v20 = vpop.f32.mrf.mxu0 }
 0x455   :  { %2503 = vst [vmem:[#allocation5 + $0xa0] sm:$0xff] %v2439_v11  ;;  %v2440_v14 = vmax.f32 %v2313_v48, 0.0  ;;  %v2315_v2 = vadd.f32 %v2314_v20, %v3547_v10 }
 0x456   :  { %v2316_v22 = vpop.f32.mrf.mxu0 }
 0x457   :  { %2504 = vst [vmem:[#allocation5 + $0xa8] sm:$0xff] %v2440_v14  ;;  %v2441_v4 = vmax.f32 %v2315_v2, 0.0  ;;  %v2317_v26 = vadd.f32 %v2316_v22, %v3552_v24 }
 0x458   :  { %v2320_v27 = vpop.f32.mrf.mxu0 }
 0x459   :  { %2505 = vst [vmem:[#allocation5 + $0xb0] sm:$0xff] %v2441_v4  ;;  %v2442_v29 = vmax.f32 %v2317_v26, 0.0  ;;  %v2321_v30 = vadd.f32 %v2320_v27, %v3547_v10 }
 0x45a   :  { %v2322_v31 = vpop.f32.mrf.mxu0 }
 0x45b   :  { %2506 = vst [vmem:[#allocation5 + $0xb8] sm:$0xff] %v2442_v29  ;;  %v2443_v32 = vmax.f32 %v2321_v30, 0.0  ;;  %v2323_v34 = vadd.f32 %v2322_v31, %v3552_v24 }
 0x45c   :  { %v2324_v46 = vpop.f32.mrf.mxu0 }
 0x45d   :  { %2507 = vst [vmem:[#allocation5 + $0xc0] sm:$0xff] %v2443_v32  ;;  %v2444_v35 = vmax.f32 %v2323_v34, 0.0  ;;  %v2325_v37 = vadd.f32 %v2324_v46, %v3547_v10 }
 0x45e   :  { %v2326_v60 = vpop.f32.mrf.mxu0 }
 0x45f   :  { %2508 = vst [vmem:[#allocation5 + $0xc8] sm:$0xff] %v2444_v35  ;;  %v2445_v38 = vmax.f32 %v2325_v37, 0.0  ;;  %v2327_v13 = vadd.f32 %v2326_v60, %v3552_v24 }
 0x460   :  { %v2330_v5 = vpop.f32.mrf.mxu0 }
 0x461   :  { %2509 = vst [vmem:[#allocation5 + $0xd0] sm:$0xff] %v2445_v38  ;;  %v2446_v39 = vmax.f32 %v2327_v13, 0.0  ;;  %v2331_v41 = vadd.f32 %v2330_v5, %v3547_v10 }
 0x462   :  { %v2332_v42 = vpop.f32.mrf.mxu0 }
 0x463   :  { %2510 = vst [vmem:[#allocation5 + $0xd8] sm:$0xff] %v2446_v39  ;;  %v2447_v43 = vmax.f32 %v2331_v41, 0.0  ;;  %v2333_v45 = vadd.f32 %v2332_v42, %v3552_v24 }
 0x464   :  { %v2334_v3 = vpop.f32.mrf.mxu0 }
 0x465   :  { %2511 = vst [vmem:[#allocation5 + $0xe0] sm:$0xff] %v2447_v43  ;;  %v2448_v47 = vmax.f32 %v2333_v45, 0.0  ;;  %v2335_v49 = vadd.f32 %v2334_v3, %v3547_v10 }
 0x466   :  { %v2336_v44 = vpop.f32.mrf.mxu0 }
 0x467   :  { %2512 = vst [vmem:[#allocation5 + $0xe8] sm:$0xff] %v2448_v47  ;;  %v2449_v28 = vmax.f32 %v2335_v49, 0.0  ;;  %v2337_v40 = vadd.f32 %v2336_v44, %v3552_v24 }
 0x468   :  { %v2340_v6 = vpop.f32.mrf.mxu0 }
 0x469   :  { %2513 = vst [vmem:[#allocation5 + $0xf0] sm:$0xff] %v2449_v28  ;;  %v2450_v33 = vmax.f32 %v2337_v40, 0.0  ;;  %v2341_v25 = vadd.f32 %v2340_v6, %v3547_v10 }
 0x46a   :  { %v2342_v50 = vpop.f32.mrf.mxu0 }
 0x46b   :  { %2514 = vst [vmem:[#allocation5 + $0xf8] sm:$0xff] %v2450_v33  ;;  %v2451_v36 = vmax.f32 %v2341_v25, 0.0  ;;  %v2343_v51 = vadd.f32 %v2342_v50, %v3552_v24 }
 0x46c   :  { %v2344_v52 = vpop.f32.mrf.mxu0 }
 0x46d   :  { %2515 = vst [vmem:[#allocation5 + $0x100] sm:$0xff] %v2451_v36  ;;  %v2452_v53 = vmax.f32 %v2343_v51, 0.0  ;;  %v2345_v8 = vadd.f32 %v2344_v52, %v3547_v10 }
 0x46e   :  { %v2346_v54 = vpop.f32.mrf.mxu0 }
 0x46f   :  { %2516 = vst [vmem:[#allocation5 + $0x108] sm:$0xff] %v2452_v53  ;;  %v2453_v58 = vmax.f32 %v2345_v8, 0.0  ;;  %v2347_v57 = vadd.f32 %v2346_v54, %v3552_v24 }
 0x470   :  { %v2350_v59 = vpop.f32.mrf.mxu0 }
 0x471   :  { %2517 = vst [vmem:[#allocation5 + $0x110] sm:$0xff] %v2453_v58  ;;  %v2454_v55 = vmax.f32 %v2347_v57, 0.0  ;;  %v2351_v61 = vadd.f32 %v2350_v59, %v3547_v10 }
 0x472   :  { %v2352_v62 = vpop.f32.mrf.mxu0 }
 0x473   :  { %2518 = vst [vmem:[#allocation5 + $0x118] sm:$0xff] %v2454_v55  ;;  %v2455_v63 = vmax.f32 %v2351_v61, 0.0  ;;  %v2353_v23 = vadd.f32 %v2352_v62, %v3552_v24 }
 0x474   :  { %v2354_v9 = vpop.f32.mrf.mxu0 }
 0x475   :  { %2519 = vst [vmem:[#allocation5 + $0x120] sm:$0xff] %v2455_v63  ;;  %v2456_v56 = vmax.f32 %v2353_v23, 0.0  ;;  %v2355_v0 = vadd.f32 %v2354_v9, %v3547_v10 }
 0x476   :  { %v2356_v21 = vpop.f32.mrf.mxu0 }
 0x477   :  { %2520 = vst [vmem:[#allocation5 + $0x128] sm:$0xff] %v2456_v56  ;;  %v2457_v1 = vmax.f32 %v2355_v0, 0.0  ;;  %v2357_v12 = vadd.f32 %v2356_v21, %v3552_v24 }
 0x478   :  { %v2360_v18 = vpop.f32.mrf.mxu0 }
 0x479   :  { %2521 = vst [vmem:[#allocation5 + $0x130] sm:$0xff] %v2457_v1  ;;  %v2458_v15 = vmax.f32 %v2357_v12, 0.0  ;;  %v2361_v16 = vadd.f32 %v2360_v18, %v3547_v10 }
 0x47a   :  { %v2362_v17 = vpop.f32.mrf.mxu0 }
 0x47b   :  { %2522 = vst [vmem:[#allocation5 + $0x138] sm:$0xff] %v2458_v15  ;;  %v2459_v7 = vmax.f32 %v2361_v16, 0.0  ;;  %v2363_v19 = vadd.f32 %v2362_v17, %v3552_v24 }
 0x47c   :  { %v2364_v11 = vpop.f32.mrf.mxu0 }
 0x47d   :  { %2523 = vst [vmem:[#allocation5 + $0x140] sm:$0xff] %v2459_v7  ;;  %v2460_v48 = vmax.f32 %v2363_v19, 0.0  ;;  %v2365_v20 = vadd.f32 %v2364_v11, %v3547_v10 }
 0x47e   :  { %v2366_v14 = vpop.f32.mrf.mxu0 }
 0x47f   :  { %2524 = vst [vmem:[#allocation5 + $0x148] sm:$0xff] %v2460_v48  ;;  %v2461_v2 = vmax.f32 %v2365_v20, 0.0  ;;  %v2367_v22 = vadd.f32 %v2366_v14, %v3552_v24 }
 0x480   :  { %v2370_v4 = vpop.f32.mrf.mxu0 }
 0x481   :  { %2525 = vst [vmem:[#allocation5 + $0x150] sm:$0xff] %v2461_v2  ;;  %v2462_v26 = vmax.f32 %v2367_v22, 0.0  ;;  %v2371_v27 = vadd.f32 %v2370_v4, %v3547_v10 }
 0x482   :  { %v2372_v29 = vpop.f32.mrf.mxu0 }
 0x483   :  { %2526 = vst [vmem:[#allocation5 + $0x158] sm:$0xff] %v2462_v26  ;;  %v2463_v30 = vmax.f32 %v2371_v27, 0.0  ;;  %v2373_v31 = vadd.f32 %v2372_v29, %v3552_v24 }
 0x484   :  { %v2374_v32 = vpop.f32.mrf.mxu0 }
 0x485   :  { %2527 = vst [vmem:[#allocation5 + $0x160] sm:$0xff] %v2463_v30  ;;  %v2464_v34 = vmax.f32 %v2373_v31, 0.0  ;;  %v2375_v46 = vadd.f32 %v2374_v32, %v3547_v10 }
 0x486   :  { %v2376_v35 = vpop.f32.mrf.mxu0 }
 0x487   :  { %2528 = vst [vmem:[#allocation5 + $0x168] sm:$0xff] %v2464_v34  ;;  %v2465_v37 = vmax.f32 %v2375_v46, 0.0  ;;  %v2377_v60 = vadd.f32 %v2376_v35, %v3552_v24 }
 0x488   :  { %v2380_v38 = vpop.f32.mrf.mxu0 }
 0x489   :  { %2529 = vst [vmem:[#allocation5 + $0x170] sm:$0xff] %v2465_v37  ;;  %v2466_v13 = vmax.f32 %v2377_v60, 0.0  ;;  %v2381_v5 = vadd.f32 %v2380_v38, %v3547_v10 }
 0x48a   :  { %v2382_v39 = vpop.f32.mrf.mxu0 }
 0x48b   :  { %2530 = vst [vmem:[#allocation5 + $0x178] sm:$0xff] %v2466_v13  ;;  %v2467_v41 = vmax.f32 %v2381_v5, 0.0  ;;  %v2383_v42 = vadd.f32 %v2382_v39, %v3552_v24 }
 0x48c   :  { %v2384_v43 = vpop.f32.mrf.mxu0 }
 0x48d   :  { %2531 = vst [vmem:[#allocation5 + $0x180] sm:$0xff] %v2467_v41  ;;  %v2468_v45 = vmax.f32 %v2383_v42, 0.0  ;;  %v2385_v3 = vadd.f32 %v2384_v43, %v3547_v10 }
 0x48e   :  { %v2386_v47 = vpop.f32.mrf.mxu0 }
 0x48f   :  { %2532 = vst [vmem:[#allocation5 + $0x188] sm:$0xff] %v2468_v45  ;;  %v2469_v49 = vmax.f32 %v2385_v3, 0.0  ;;  %v2387_v44 = vadd.f32 %v2386_v47, %v3552_v24 }
 0x490   :  { %v2390_v28 = vpop.f32.mrf.mxu0 }
 0x491   :  { %2533 = vst [vmem:[#allocation5 + $0x190] sm:$0xff] %v2469_v49  ;;  %v2470_v40 = vmax.f32 %v2387_v44, 0.0  ;;  %v2391_v6 = vadd.f32 %v2390_v28, %v3547_v10 }
 0x492   :  { %v2392_v33 = vpop.f32.mrf.mxu0 }
 0x493   :  { %2534 = vst [vmem:[#allocation5 + $0x198] sm:$0xff] %v2470_v40  ;;  %v2471_v25 = vmax.f32 %v2391_v6, 0.0  ;;  %v2393_v50 = vadd.f32 %v2392_v33, %v3552_v24 }
 0x494   :  { %v2394_v36 = vpop.f32.mrf.mxu0 }
 0x495   :  { %2535 = vst [vmem:[#allocation5 + $0x1a0] sm:$0xff] %v2471_v25  ;;  %v2472_v51 = vmax.f32 %v2393_v50, 0.0  ;;  %v2395_v52 = vadd.f32 %v2394_v36, %v3547_v10 }
 0x496   :  { %v2396_v53 = vpop.f32.mrf.mxu0 }
 0x497   :  { %2536 = vst [vmem:[#allocation5 + $0x1a8] sm:$0xff] %v2472_v51  ;;  %v2473_v8 = vmax.f32 %v2395_v52, 0.0  ;;  %v2397_v54 = vadd.f32 %v2396_v53, %v3552_v24 }
 0x498   :  { %v2400_v58 = vpop.f32.mrf.mxu0 }
 0x499   :  { %2537 = vst [vmem:[#allocation5 + $0x1b0] sm:$0xff] %v2473_v8  ;;  %v2474_v57 = vmax.f32 %v2397_v54, 0.0  ;;  %v2401_v59 = vadd.f32 %v2400_v58, %v3547_v10 }
 0x49a   :  { %v2402_v55 = vpop.f32.mrf.mxu0 }
 0x49b   :  { %2538 = vst [vmem:[#allocation5 + $0x1b8] sm:$0xff] %v2474_v57  ;;  %v2475_v61 = vmax.f32 %v2401_v59, 0.0  ;;  %v2403_v62 = vadd.f32 %v2402_v55, %v3552_v24 }
 0x49c   :  { %v2404_v63 = vpop.f32.mrf.mxu0 }
 0x49d   :  { %2539 = vst [vmem:[#allocation5 + $0x1c0] sm:$0xff] %v2475_v61  ;;  %v2476_v23 = vmax.f32 %v2403_v62, 0.0  ;;  %v2405_v9 = vadd.f32 %v2404_v63, %v3547_v10 }
 0x49e   :  { %v2406_v56 = vpop.f32.mrf.mxu0 }
 0x49f   :  { %2540 = vst [vmem:[#allocation5 + $0x1c8] sm:$0xff] %v2476_v23  ;;  %v2477_v0 = vmax.f32 %v2405_v9, 0.0  ;;  %v2407_v21 = vadd.f32 %v2406_v56, %v3552_v24 }
 0x4a0   :  { %v2410_v1 = vpop.f32.mrf.mxu0 }
 0x4a1   :  { %2541 = vst [vmem:[#allocation5 + $0x1d0] sm:$0xff] %v2477_v0  ;;  %v2478_v12 = vmax.f32 %v2407_v21, 0.0  ;;  %v2411_v18 = vadd.f32 %v2410_v1, %v3547_v10 }
 0x4a2   :  { %v2412_v15 = vpop.f32.mrf.mxu0 }
 0x4a3   :  { %2542 = vst [vmem:[#allocation5 + $0x1d8] sm:$0xff] %v2478_v12  ;;  %v2479_v16 = vmax.f32 %v2411_v18, 0.0  ;;  %v2413_v17 = vadd.f32 %v2412_v15, %v3552_v24 }
 0x4a4   :  { %v2414_v7 = vpop.f32.mrf.mxu0 }
 0x4a5   :  { %2543 = vst [vmem:[#allocation5 + $0x1e0] sm:$0xff] %v2479_v16  ;;  %v2480_v19 = vmax.f32 %v2413_v17, 0.0  ;;  %v2415_v11 = vadd.f32 %v2414_v7, %v3547_v10 }
 0x4a6   :  { %v2416_v48 = vpop.f32.mrf.mxu0 }
 0x4a7   :  { %2544 = vst [vmem:[#allocation5 + $0x1e8] sm:$0xff] %v2480_v19  ;;  %v2481_v20 = vmax.f32 %v2415_v11, 0.0  ;;  %v2417_v14 = vadd.f32 %v2416_v48, %v3552_v24 }
 0x4a9   :  { %2545 = vst [vmem:[#allocation5 + $0x1f0] sm:$0xff] %v2481_v20  ;;  %v2482_v2 = vmax.f32 %v2417_v14, 0.0 }
 0x4ab   :  { %2546 = vst [vmem:[#allocation5 + $0x1f8] sm:$0xff] %v2482_v2 }
 0x4ac   :  { %3014 = shalt.err (!%p3011_p9)
}
 0x4ad   :  { %s3032_s16 = smov 256   ;;  %s3033_s17 = smov 16  }
 0x4ae   :  { %2558 = dma.vmem_to_hbm [thread:$0]  %s2553_s14, 8192, %s3625_s4, [#allocation4], %s3032_s16, %s3032_s16, %s3033_s17  }
 0x4af   :  { %3025 = dma.done.wait [#allocation4], 8192  }
 0x4b0   :  { %3026 = vsyncadd [#allocation4], 4294959104 }
 0x4b1   :  { %2562 = vsyncpa [#allocation3], 1 }
 0x4b2   :  { %2563 = vsyncpa [#allocation4], 1 }

</bundles_post_ra>
